<compile_context>
chip_gen: v7x
topology: tpu7x:2x2x1
jax: 0.10.0
libtpu: 0.0.40
codegen_flags: <defaults>
</compile_context>

<pallas_src>
import jax
import jax.numpy as jnp
from jax import lax
from jax.experimental import pallas as pl
from jax.experimental.pallas import tpu as pltpu


# ---------------------- fused attention + global-avg-pool kernel ----------------------

def attention_pool_kernel(xq_ref, x_ref, wq_ref, wk_ref, wv_ref, wo_ref, b_ref,
                          feats_ref, pooled_ref, k_scr, v_scr):
    """One grid step = (batch element b, query tile i).

    xq_ref    : (tq, C)    bf16  query-token tile
    x_ref     : (N,  C)    bf16  full token sequence of batch element b (K/V source)
    wq_ref    : (H, C, hd) bf16  per-head Q weight, softmax scale pre-folded
    wk_ref    : (H, C, hd) bf16
    wv_ref    : (H, C, hd) bf16
    wo_ref    : (H, hd, C) bf16  per-head rows of the (C, C) output projection
    b_ref     : (1, C)     f32   output-projection bias
    feats_ref : (tq, C)          attention output tile (forward_features analogue)
    pooled_ref: (1, C)     f32   running column sum -> mean over tokens (fused avg-pool)
    k_scr/v_scr: (H, N, hd) bf16 VMEM scratch, resident across the query-tile axis
    """
    H, C, hd = wq_ref.shape
    N = x_ref.shape[0]
    tq = feats_ref.shape[0]

    i = pl.program_id(1)
    last = pl.num_programs(1) - 1

    # ---- per-batch-element prologue: K/V projections + pooled-accumulator init ----
    @pl.when(i == 0)
    def _():
        x_all = x_ref[...]                                           # (N, C) bf16
        for h in range(H):                                           # static unroll
            k_scr[h] = jnp.dot(x_all, wk_ref[h],
                               preferred_element_type=jnp.float32).astype(k_scr.dtype)
            v_scr[h] = jnp.dot(x_all, wv_ref[h],
                               preferred_element_type=jnp.float32).astype(v_scr.dtype)
        pooled_ref[...] = jnp.zeros_like(pooled_ref)

    xq = xq_ref[...]                                                 # (tq, C) bf16

    # ---- per-head attention; output projection accumulated into (tq, C) f32 ----
    acc = jnp.zeros((tq, C), jnp.float32)
    for h in range(H):                                               # static unroll
        # Q projection for this head (softmax scale already folded into wq).
        q_h = jnp.dot(xq, wq_ref[h], preferred_element_type=jnp.float32)      # (tq, hd)
        # Scores: contract head_dim directly (A @ B^T form) -- no materialized k.T.
        s = lax.dot_general(q_h.astype(jnp.bfloat16), k_scr[h],
                            (((1,), (1,)), ((), ())),
                            preferred_element_type=jnp.float32)               # (tq, N)
        # Numerically stable softmax in f32; divide via EUP approximate reciprocal.
        s = s - jnp.max(s, axis=-1, keepdims=True)
        p = jnp.exp(s)
        p = p * pl.reciprocal(jnp.sum(p, axis=-1, keepdims=True), approx=True)
        # Attention-weighted values (bf16 into the MXU, f32 accumulation).
        ctx = jnp.dot(p.astype(jnp.bfloat16), v_scr[h],
                      preferred_element_type=jnp.float32)                     # (tq, hd)
        # Per-head slice of the output projection: full-C (lane-dense) output width,
        # accumulated in f32 -- equivalent to the transpose/reshape concat + (C, C)
        # projection of the reference, without any (H, tq, C) intermediate.
        acc = acc + jnp.dot(ctx.astype(jnp.bfloat16), wo_ref[h],
                            preferred_element_type=jnp.float32)               # (tq, C)

    out = acc + b_ref[...]
    feats_ref[...] = out.astype(feats_ref.dtype)

    # ---- fused AdaptiveAvgPool2d((1,1)) + Flatten: accumulate column sums ----
    pooled_ref[...] += jnp.sum(out, axis=0, keepdims=True)

    @pl.when(i == last)
    def _():
        pooled_ref[...] *= (1.0 / N)


def _pick_q_tile(n, target=256):
    """Largest tile <= target that divides n (multiple of 8 when possible)."""
    if n <= target:
        return n
    for t in (256, 128, 64, 32, 16, 8):
        if t <= target and n % t == 0:
            return t
    return n


def attention_pool(x, wqkv, wproj, bproj, num_heads, *, q_tile=None):
    """Multi-head self-attention + fused global average pool.

    x (B, N, C); fused qkv weight (C, 3C); output projection (C, C) + bias.
    Returns (feats (B, N, C) in x.dtype, pooled (B, C) f32).
    """
    B, N, C = x.shape
    assert C % num_heads == 0
    hd = C // num_heads
    scale = hd ** -0.5

    tq = _pick_q_tile(N) if q_tile is None else q_tile
    assert N % tq == 0

    # Host-side weight prep: per-head bf16 layout, softmax scale folded into Wq.
    w = wqkv.reshape(C, 3, num_heads, hd)                              # (Cin, qkv, H, hd)
    wq = (w[:, 0] * scale).transpose(1, 0, 2).astype(jnp.bfloat16)     # (H, Cin, hd)
    wk = w[:, 1].transpose(1, 0, 2).astype(jnp.bfloat16)               # (H, Cin, hd)
    wv = w[:, 2].transpose(1, 0, 2).astype(jnp.bfloat16)               # (H, Cin, hd)
    wo = wproj.reshape(num_heads, hd, C).astype(jnp.bfloat16)          # (H, hd, Cout)
    bias = bproj.reshape(1, C).astype(jnp.float32)
    xb = x.astype(jnp.bfloat16)

    feats, pooled = pl.pallas_call(
        attention_pool_kernel,
        out_shape=(
            jax.ShapeDtypeStruct((B, N, C), x.dtype),       # forward_features output
            jax.ShapeDtypeStruct((B, 1, C), jnp.float32),   # fused global-average pool
        ),
        grid=(B, N // tq),
        in_specs=[
            pl.BlockSpec((None, tq, C), lambda b, i: (b, i, 0)),        # query tile
            pl.BlockSpec((None, N, C), lambda b, i: (b, 0, 0)),         # full seq (K/V src)
            pl.BlockSpec((num_heads, C, hd), lambda b, i: (0, 0, 0)),   # Wq (scaled)
            pl.BlockSpec((num_heads, C, hd), lambda b, i: (0, 0, 0)),   # Wk
            pl.BlockSpec((num_heads, C, hd), lambda b, i: (0, 0, 0)),   # Wv
            pl.BlockSpec((num_heads, hd, C), lambda b, i: (0, 0, 0)),   # Wproj per head
            pl.BlockSpec((1, C), lambda b, i: (0, 0)),                  # bias
        ],
        out_specs=(
            pl.BlockSpec((None, tq, C), lambda b, i: (b, i, 0)),        # feats tile
            pl.BlockSpec((None, 1, C), lambda b, i: (b, 0, 0)),         # pooled accumulator
        ),
        scratch_shapes=[
            pltpu.VMEM((num_heads, N, hd), jnp.bfloat16),               # K resident
            pltpu.VMEM((num_heads, N, hd), jnp.bfloat16),               # V resident
        ],
        compiler_params=pltpu.CompilerParams(
            # Batch axis megacore-parallel; query-tile axis "arbitrary" because the
            # K/V scratch written at i == 0 and the pooled accumulator are reused i > 0.
            dimension_semantics=("parallel", "arbitrary"),
            vmem_limit_bytes=64 * 1024 * 1024,
        ),
    )(xb, xb, wq, wk, wv, wo, bias)
    return feats, pooled.reshape(B, C)


# ---------------------------------- module forward -----------------------------------

def features_bb_forward(x_tokens, wqkv, wproj, bproj, num_heads, *, q_tile=None):
    """FeaturesBB.forward analogue: backbone features -> global avg pool -> flatten."""
    # TODO(synk): the pretrained timm backbone (hparams['backbone']) cannot be reproduced
    # in-script; its forward_features is represented by one ViT-style self-attention
    # block. Dropout / fc1 are unused by FeaturesBB.forward.
    _, pooled = attention_pool(x_tokens, wqkv, wproj, bproj, num_heads, q_tile=q_tile)
    return pooled.astype(x_tokens.dtype)


# ------------------------------------ references --------------------------------------

def attention_reference(x, wqkv, wproj, bproj, num_heads):
    B, N, C = x.shape
    hd = C // num_heads
    scale = hd ** -0.5
    qkv = jnp.einsum("bnc,cd->bnd", x, wqkv)
    qkv = qkv.reshape(B, N, 3, num_heads, hd).transpose(2, 0, 3, 1, 4)
    q, k, v = qkv[0], qkv[1], qkv[2]
    attn = jax.nn.softmax(jnp.einsum("bhnd,bhmd->bhnm", q, k) * scale, axis=-1)
    out = jnp.einsum("bhnm,bhmd->bhnd", attn, v).transpose(0, 2, 1, 3).reshape(B, N, C)
    return jnp.einsum("bnc,cd->bnd", out, wproj) + bproj


def features_bb_reference(x, wqkv, wproj, bproj, num_heads):
    return jnp.mean(attention_reference(x, wqkv, wproj, bproj, num_heads), axis=1)


# --------------------------------------- test ------------------------------------------

if __name__ == "__main__":
    B, N, C = 2, 16, 32
    num_heads = 8

    key = jax.random.PRNGKey(0)
    kx, kqkv, kp, kb = jax.random.split(key, 4)

    x = jax.random.normal(kx, (B, N, C), dtype=jnp.float32)
    # nn.Linear(dim, dim*3, bias=False) weight (3C, C) stored transposed (C, 3C).
    wqkv = jax.random.normal(kqkv, (C, 3 * C), dtype=jnp.float32) * 0.05
    # nn.Linear(dim, dim) weight (C, C) stored transposed + bias (1, C).
    wproj = jax.random.normal(kp, (C, C), dtype=jnp.float32) * 0.05
    bproj = jax.random.normal(kb, (1, C), dtype=jnp.float32) * 0.05

    # q_tile=8 -> grid (B, 2): exercises the resident-K/V path and the pooled
    # accumulator across multiple query tiles.
    feats, pooled = attention_pool(x, wqkv, wproj, bproj, num_heads, q_tile=8)
    pooled_fwd = features_bb_forward(x, wqkv, wproj, bproj, num_heads, q_tile=8)
    feats, pooled, pooled_fwd = jax.block_until_ready((feats, pooled, pooled_fwd))

    feats_ref = attention_reference(x, wqkv, wproj, bproj, num_heads)
    pooled_ref = features_bb_reference(x, wqkv, wproj, bproj, num_heads)

    assert feats.shape == (B, N, C) and pooled_fwd.shape == (B, C)
    # bf16 MXU operands -> compare against the f32 reference with a bf16-level tolerance.
    assert jnp.allclose(feats, feats_ref, atol=2e-2, rtol=2e-2), "attention mismatch"
    assert jnp.allclose(pooled, pooled_ref, atol=2e-2, rtol=2e-2), "pooled mismatch"
    assert jnp.allclose(pooled_fwd, pooled_ref, atol=2e-2, rtol=2e-2), "forward mismatch"

    print("KERNEL_OK")
</pallas_src>

<mosaic_0001>
module attributes {stable_mosaic.version = 11 : i64} {
  func.func @attention_pool_kernel(%arg0: i32, %arg1: i32, %arg2: memref<1x8x32xbf16, #tpu.memory_space<vmem>>, %arg3: memref<1x16x32xbf16, #tpu.memory_space<vmem>>, %arg4: memref<8x32x4xbf16, #tpu.memory_space<vmem>>, %arg5: memref<8x32x4xbf16, #tpu.memory_space<vmem>>, %arg6: memref<8x32x4xbf16, #tpu.memory_space<vmem>>, %arg7: memref<8x4x32xbf16, #tpu.memory_space<vmem>>, %arg8: memref<1x32xf32, #tpu.memory_space<vmem>>, %arg9: memref<1x8x32xf32, #tpu.memory_space<vmem>>, %arg10: memref<1x1x32xf32, #tpu.memory_space<vmem>>, %arg11: memref<8x16x4xbf16, #tpu.memory_space<vmem>>, %arg12: memref<8x16x4xbf16, #tpu.memory_space<vmem>>) attributes {dimension_semantics = [#tpu.dimension_semantics<parallel>, #tpu.dimension_semantics<arbitrary>], iteration_bounds = array<i64: 2, 2>, scalar_prefetch = 0 : i64, scratch_operands = 2 : i64, tpu.core_type = #tpu.core_type<tc>, window_params = [{transform_indices = @transform_0, window_bounds = array<i64: 1, 8, 32>}, {transform_indices = @transform_1, window_bounds = array<i64: 1, 16, 32>}, {pipeline_mode = #tpu.pipeline_mode<synchronous>, transform_indices = @transform_2, window_bounds = array<i64: 8, 32, 4>}, {pipeline_mode = #tpu.pipeline_mode<synchronous>, transform_indices = @transform_3, window_bounds = array<i64: 8, 32, 4>}, {pipeline_mode = #tpu.pipeline_mode<synchronous>, transform_indices = @transform_4, window_bounds = array<i64: 8, 32, 4>}, {pipeline_mode = #tpu.pipeline_mode<synchronous>, transform_indices = @transform_5, window_bounds = array<i64: 8, 4, 32>}, {pipeline_mode = #tpu.pipeline_mode<synchronous>, transform_indices = @transform_6, window_bounds = array<i64: 1, 32>}, {transform_indices = @transform_7, window_bounds = array<i64: 1, 8, 32>}, {transform_indices = @transform_8, window_bounds = array<i64: 1, 1, 32>}]} {
    %c0_i32 = arith.constant 0 : i32
    %0 = arith.cmpi eq, %arg1, %c0_i32 : i32
    %1 = arith.extui %0 : i1 to i32
    %c0_i32_0 = arith.constant 0 : i32
    %2 = arith.cmpi ne, %1, %c0_i32_0 : i32
    scf.if %2 {
      %c0_153 = arith.constant 0 : index
      %c0_154 = arith.constant 0 : index
      %c0_155 = arith.constant 0 : index
      %231 = vector.load %arg3[%c0_153, %c0_154, %c0_155] : memref<1x16x32xbf16, #tpu.memory_space<vmem>>, vector<1x16x32xbf16>
      %232 = vector.shape_cast %231 : vector<1x16x32xbf16> to vector<16x32xbf16>
      %c0_156 = arith.constant 0 : index
      %c0_157 = arith.constant 0 : index
      %c0_158 = arith.constant 0 : index
      %233 = vector.load %arg5[%c0_156, %c0_157, %c0_158] : memref<8x32x4xbf16, #tpu.memory_space<vmem>>, vector<1x32x4xbf16>
      %234 = vector.shape_cast %233 : vector<1x32x4xbf16> to vector<32x4xbf16>
      %cst_159 = arith.constant dense<0.000000e+00> : vector<16x4xf32>
      %235 = tpu.matmul %232, %234, %cst_159 {dimension_numbers = #tpu.dot_dimension_numbers<[1], [0], [0], [1], [0, 0, 1, 1], [], []>} : vector<16x32xbf16>, vector<32x4xbf16>, vector<16x4xf32> -> vector<16x4xf32>
      %236 = arith.truncf %235 : vector<16x4xf32> to vector<16x4xbf16>
      %c0_160 = arith.constant 0 : index
      %c0_161 = arith.constant 0 : index
      %c0_162 = arith.constant 0 : index
      %237 = vector.load %arg11[%c0_160, %c0_161, %c0_162] : memref<8x16x4xbf16, #tpu.memory_space<vmem>>, vector<1x16x4xbf16>
      %238 = vector.shape_cast %237 : vector<1x16x4xbf16> to vector<16x4xbf16>
      %239 = vector.shape_cast %236 : vector<16x4xbf16> to vector<1x16x4xbf16>
      tpu.vector_store %arg11[%c0_160, %c0_161, %c0_162], %239 {strides = array<i32>} : memref<8x16x4xbf16, #tpu.memory_space<vmem>>, vector<1x16x4xbf16>,
      %c0_163 = arith.constant 0 : index
      %c0_164 = arith.constant 0 : index
      %c0_165 = arith.constant 0 : index
      %240 = vector.load %arg6[%c0_163, %c0_164, %c0_165] : memref<8x32x4xbf16, #tpu.memory_space<vmem>>, vector<1x32x4xbf16>
      %241 = vector.shape_cast %240 : vector<1x32x4xbf16> to vector<32x4xbf16>
      %cst_166 = arith.constant dense<0.000000e+00> : vector<16x4xf32>
      %242 = tpu.matmul %232, %241, %cst_166 {dimension_numbers = #tpu.dot_dimension_numbers<[1], [0], [0], [1], [0, 0, 1, 1], [], []>} : vector<16x32xbf16>, vector<32x4xbf16>, vector<16x4xf32> -> vector<16x4xf32>
      %243 = arith.truncf %242 : vector<16x4xf32> to vector<16x4xbf16>
      %c0_167 = arith.constant 0 : index
      %c0_168 = arith.constant 0 : index
      %c0_169 = arith.constant 0 : index
      %244 = vector.load %arg12[%c0_167, %c0_168, %c0_169] : memref<8x16x4xbf16, #tpu.memory_space<vmem>>, vector<1x16x4xbf16>
      %245 = vector.shape_cast %244 : vector<1x16x4xbf16> to vector<16x4xbf16>
      %246 = vector.shape_cast %243 : vector<16x4xbf16> to vector<1x16x4xbf16>
      tpu.vector_store %arg12[%c0_167, %c0_168, %c0_169], %246 {strides = array<i32>} : memref<8x16x4xbf16, #tpu.memory_space<vmem>>, vector<1x16x4xbf16>,
      %c1_170 = arith.constant 1 : index
      %c0_171 = arith.constant 0 : index
      %c0_172 = arith.constant 0 : index
      %247 = vector.load %arg5[%c1_170, %c0_171, %c0_172] : memref<8x32x4xbf16, #tpu.memory_space<vmem>>, vector<1x32x4xbf16>
      %248 = vector.shape_cast %247 : vector<1x32x4xbf16> to vector<32x4xbf16>
      %cst_173 = arith.constant dense<0.000000e+00> : vector<16x4xf32>
      %249 = tpu.matmul %232, %248, %cst_173 {dimension_numbers = #tpu.dot_dimension_numbers<[1], [0], [0], [1], [0, 0, 1, 1], [], []>} : vector<16x32xbf16>, vector<32x4xbf16>, vector<16x4xf32> -> vector<16x4xf32>
      %250 = arith.truncf %249 : vector<16x4xf32> to vector<16x4xbf16>
      %c1_174 = arith.constant 1 : index
      %c0_175 = arith.constant 0 : index
      %c0_176 = arith.constant 0 : index
      %251 = vector.load %arg11[%c1_174, %c0_175, %c0_176] : memref<8x16x4xbf16, #tpu.memory_space<vmem>>, vector<1x16x4xbf16>
      %252 = vector.shape_cast %251 : vector<1x16x4xbf16> to vector<16x4xbf16>
      %253 = vector.shape_cast %250 : vector<16x4xbf16> to vector<1x16x4xbf16>
      tpu.vector_store %arg11[%c1_174, %c0_175, %c0_176], %253 {strides = array<i32>} : memref<8x16x4xbf16, #tpu.memory_space<vmem>>, vector<1x16x4xbf16>,
      %c1_177 = arith.constant 1 : index
      %c0_178 = arith.constant 0 : index
      %c0_179 = arith.constant 0 : index
      %254 = vector.load %arg6[%c1_177, %c0_178, %c0_179] : memref<8x32x4xbf16, #tpu.memory_space<vmem>>, vector<1x32x4xbf16>
      %255 = vector.shape_cast %254 : vector<1x32x4xbf16> to vector<32x4xbf16>
      %cst_180 = arith.constant dense<0.000000e+00> : vector<16x4xf32>
      %256 = tpu.matmul %232, %255, %cst_180 {dimension_numbers = #tpu.dot_dimension_numbers<[1], [0], [0], [1], [0, 0, 1, 1], [], []>} : vector<16x32xbf16>, vector<32x4xbf16>, vector<16x4xf32> -> vector<16x4xf32>
      %257 = arith.truncf %256 : vector<16x4xf32> to vector<16x4xbf16>
      %c1_181 = arith.constant 1 : index
      %c0_182 = arith.constant 0 : index
      %c0_183 = arith.constant 0 : index
      %258 = vector.load %arg12[%c1_181, %c0_182, %c0_183] : memref<8x16x4xbf16, #tpu.memory_space<vmem>>, vector<1x16x4xbf16>
      %259 = vector.shape_cast %258 : vector<1x16x4xbf16> to vector<16x4xbf16>
      %260 = vector.shape_cast %257 : vector<16x4xbf16> to vector<1x16x4xbf16>
      tpu.vector_store %arg12[%c1_181, %c0_182, %c0_183], %260 {strides = array<i32>} : memref<8x16x4xbf16, #tpu.memory_space<vmem>>, vector<1x16x4xbf16>,
      %c2_184 = arith.constant 2 : index
      %c0_185 = arith.constant 0 : index
      %c0_186 = arith.constant 0 : index
      %261 = vector.load %arg5[%c2_184, %c0_185, %c0_186] : memref<8x32x4xbf16, #tpu.memory_space<vmem>>, vector<1x32x4xbf16>
      %262 = vector.shape_cast %261 : vector<1x32x4xbf16> to vector<32x4xbf16>
      %cst_187 = arith.constant dense<0.000000e+00> : vector<16x4xf32>
      %263 = tpu.matmul %232, %262, %cst_187 {dimension_numbers = #tpu.dot_dimension_numbers<[1], [0], [0], [1], [0, 0, 1, 1], [], []>} : vector<16x32xbf16>, vector<32x4xbf16>, vector<16x4xf32> -> vector<16x4xf32>
      %264 = arith.truncf %263 : vector<16x4xf32> to vector<16x4xbf16>
      %c2_188 = arith.constant 2 : index
      %c0_189 = arith.constant 0 : index
      %c0_190 = arith.constant 0 : index
      %265 = vector.load %arg11[%c2_188, %c0_189, %c0_190] : memref<8x16x4xbf16, #tpu.memory_space<vmem>>, vector<1x16x4xbf16>
      %266 = vector.shape_cast %265 : vector<1x16x4xbf16> to vector<16x4xbf16>
      %267 = vector.shape_cast %264 : vector<16x4xbf16> to vector<1x16x4xbf16>
      tpu.vector_store %arg11[%c2_188, %c0_189, %c0_190], %267 {strides = array<i32>} : memref<8x16x4xbf16, #tpu.memory_space<vmem>>, vector<1x16x4xbf16>,
      %c2_191 = arith.constant 2 : index
      %c0_192 = arith.constant 0 : index
      %c0_193 = arith.constant 0 : index
      %268 = vector.load %arg6[%c2_191, %c0_192, %c0_193] : memref<8x32x4xbf16, #tpu.memory_space<vmem>>, vector<1x32x4xbf16>
      %269 = vector.shape_cast %268 : vector<1x32x4xbf16> to vector<32x4xbf16>
      %cst_194 = arith.constant dense<0.000000e+00> : vector<16x4xf32>
      %270 = tpu.matmul %232, %269, %cst_194 {dimension_numbers = #tpu.dot_dimension_numbers<[1], [0], [0], [1], [0, 0, 1, 1], [], []>} : vector<16x32xbf16>, vector<32x4xbf16>, vector<16x4xf32> -> vector<16x4xf32>
      %271 = arith.truncf %270 : vector<16x4xf32> to vector<16x4xbf16>
      %c2_195 = arith.constant 2 : index
      %c0_196 = arith.constant 0 : index
      %c0_197 = arith.constant 0 : index
      %272 = vector.load %arg12[%c2_195, %c0_196, %c0_197] : memref<8x16x4xbf16, #tpu.memory_space<vmem>>, vector<1x16x4xbf16>
      %273 = vector.shape_cast %272 : vector<1x16x4xbf16> to vector<16x4xbf16>
      %274 = vector.shape_cast %271 : vector<16x4xbf16> to vector<1x16x4xbf16>
      tpu.vector_store %arg12[%c2_195, %c0_196, %c0_197], %274 {strides = array<i32>} : memref<8x16x4xbf16, #tpu.memory_space<vmem>>, vector<1x16x4xbf16>,
      %c3_198 = arith.constant 3 : index
      %c0_199 = arith.constant 0 : index
      %c0_200 = arith.constant 0 : index
      %275 = vector.load %arg5[%c3_198, %c0_199, %c0_200] : memref<8x32x4xbf16, #tpu.memory_space<vmem>>, vector<1x32x4xbf16>
      %276 = vector.shape_cast %275 : vector<1x32x4xbf16> to vector<32x4xbf16>
      %cst_201 = arith.constant dense<0.000000e+00> : vector<16x4xf32>
      %277 = tpu.matmul %232, %276, %cst_201 {dimension_numbers = #tpu.dot_dimension_numbers<[1], [0], [0], [1], [0, 0, 1, 1], [], []>} : vector<16x32xbf16>, vector<32x4xbf16>, vector<16x4xf32> -> vector<16x4xf32>
      %278 = arith.truncf %277 : vector<16x4xf32> to vector<16x4xbf16>
      %c3_202 = arith.constant 3 : index
      %c0_203 = arith.constant 0 : index
      %c0_204 = arith.constant 0 : index
      %279 = vector.load %arg11[%c3_202, %c0_203, %c0_204] : memref<8x16x4xbf16, #tpu.memory_space<vmem>>, vector<1x16x4xbf16>
      %280 = vector.shape_cast %279 : vector<1x16x4xbf16> to vector<16x4xbf16>
      %281 = vector.shape_cast %278 : vector<16x4xbf16> to vector<1x16x4xbf16>
      tpu.vector_store %arg11[%c3_202, %c0_203, %c0_204], %281 {strides = array<i32>} : memref<8x16x4xbf16, #tpu.memory_space<vmem>>, vector<1x16x4xbf16>,
      %c3_205 = arith.constant 3 : index
      %c0_206 = arith.constant 0 : index
      %c0_207 = arith.constant 0 : index
      %282 = vector.load %arg6[%c3_205, %c0_206, %c0_207] : memref<8x32x4xbf16, #tpu.memory_space<vmem>>, vector<1x32x4xbf16>
      %283 = vector.shape_cast %282 : vector<1x32x4xbf16> to vector<32x4xbf16>
      %cst_208 = arith.constant dense<0.000000e+00> : vector<16x4xf32>
      %284 = tpu.matmul %232, %283, %cst_208 {dimension_numbers = #tpu.dot_dimension_numbers<[1], [0], [0], [1], [0, 0, 1, 1], [], []>} : vector<16x32xbf16>, vector<32x4xbf16>, vector<16x4xf32> -> vector<16x4xf32>
      %285 = arith.truncf %284 : vector<16x4xf32> to vector<16x4xbf16>
      %c3_209 = arith.constant 3 : index
      %c0_210 = arith.constant 0 : index
      %c0_211 = arith.constant 0 : index
      %286 = vector.load %arg12[%c3_209, %c0_210, %c0_211] : memref<8x16x4xbf16, #tpu.memory_space<vmem>>, vector<1x16x4xbf16>
      %287 = vector.shape_cast %286 : vector<1x16x4xbf16> to vector<16x4xbf16>
      %288 = vector.shape_cast %285 : vector<16x4xbf16> to vector<1x16x4xbf16>
      tpu.vector_store %arg12[%c3_209, %c0_210, %c0_211], %288 {strides = array<i32>} : memref<8x16x4xbf16, #tpu.memory_space<vmem>>, vector<1x16x4xbf16>,
      %c4_212 = arith.constant 4 : index
      %c0_213 = arith.constant 0 : index
      %c0_214 = arith.constant 0 : index
      %289 = vector.load %arg5[%c4_212, %c0_213, %c0_214] : memref<8x32x4xbf16, #tpu.memory_space<vmem>>, vector<1x32x4xbf16>
      %290 = vector.shape_cast %289 : vector<1x32x4xbf16> to vector<32x4xbf16>
      %cst_215 = arith.constant dense<0.000000e+00> : vector<16x4xf32>
      %291 = tpu.matmul %232, %290, %cst_215 {dimension_numbers = #tpu.dot_dimension_numbers<[1], [0], [0], [1], [0, 0, 1, 1], [], []>} : vector<16x32xbf16>, vector<32x4xbf16>, vector<16x4xf32> -> vector<16x4xf32>
      %292 = arith.truncf %291 : vector<16x4xf32> to vector<16x4xbf16>
      %c4_216 = arith.constant 4 : index
      %c0_217 = arith.constant 0 : index
      %c0_218 = arith.constant 0 : index
      %293 = vector.load %arg11[%c4_216, %c0_217, %c0_218] : memref<8x16x4xbf16, #tpu.memory_space<vmem>>, vector<1x16x4xbf16>
      %294 = vector.shape_cast %293 : vector<1x16x4xbf16> to vector<16x4xbf16>
      %295 = vector.shape_cast %292 : vector<16x4xbf16> to vector<1x16x4xbf16>
      tpu.vector_store %arg11[%c4_216, %c0_217, %c0_218], %295 {strides = array<i32>} : memref<8x16x4xbf16, #tpu.memory_space<vmem>>, vector<1x16x4xbf16>,
      %c4_219 = arith.constant 4 : index
      %c0_220 = arith.constant 0 : index
      %c0_221 = arith.constant 0 : index
      %296 = vector.load %arg6[%c4_219, %c0_220, %c0_221] : memref<8x32x4xbf16, #tpu.memory_space<vmem>>, vector<1x32x4xbf16>
      %297 = vector.shape_cast %296 : vector<1x32x4xbf16> to vector<32x4xbf16>
      %cst_222 = arith.constant dense<0.000000e+00> : vector<16x4xf32>
      %298 = tpu.matmul %232, %297, %cst_222 {dimension_numbers = #tpu.dot_dimension_numbers<[1], [0], [0], [1], [0, 0, 1, 1], [], []>} : vector<16x32xbf16>, vector<32x4xbf16>, vector<16x4xf32> -> vector<16x4xf32>
      %299 = arith.truncf %298 : vector<16x4xf32> to vector<16x4xbf16>
      %c4_223 = arith.constant 4 : index
      %c0_224 = arith.constant 0 : index
      %c0_225 = arith.constant 0 : index
      %300 = vector.load %arg12[%c4_223, %c0_224, %c0_225] : memref<8x16x4xbf16, #tpu.memory_space<vmem>>, vector<1x16x4xbf16>
      %301 = vector.shape_cast %300 : vector<1x16x4xbf16> to vector<16x4xbf16>
      %302 = vector.shape_cast %299 : vector<16x4xbf16> to vector<1x16x4xbf16>
      tpu.vector_store %arg12[%c4_223, %c0_224, %c0_225], %302 {strides = array<i32>} : memref<8x16x4xbf16, #tpu.memory_space<vmem>>, vector<1x16x4xbf16>,
      %c5_226 = arith.constant 5 : index
      %c0_227 = arith.constant 0 : index
      %c0_228 = arith.constant 0 : index
      %303 = vector.load %arg5[%c5_226, %c0_227, %c0_228] : memref<8x32x4xbf16, #tpu.memory_space<vmem>>, vector<1x32x4xbf16>
      %304 = vector.shape_cast %303 : vector<1x32x4xbf16> to vector<32x4xbf16>
      %cst_229 = arith.constant dense<0.000000e+00> : vector<16x4xf32>
      %305 = tpu.matmul %232, %304, %cst_229 {dimension_numbers = #tpu.dot_dimension_numbers<[1], [0], [0], [1], [0, 0, 1, 1], [], []>} : vector<16x32xbf16>, vector<32x4xbf16>, vector<16x4xf32> -> vector<16x4xf32>
      %306 = arith.truncf %305 : vector<16x4xf32> to vector<16x4xbf16>
      %c5_230 = arith.constant 5 : index
      %c0_231 = arith.constant 0 : index
      %c0_232 = arith.constant 0 : index
      %307 = vector.load %arg11[%c5_230, %c0_231, %c0_232] : memref<8x16x4xbf16, #tpu.memory_space<vmem>>, vector<1x16x4xbf16>
      %308 = vector.shape_cast %307 : vector<1x16x4xbf16> to vector<16x4xbf16>
      %309 = vector.shape_cast %306 : vector<16x4xbf16> to vector<1x16x4xbf16>
      tpu.vector_store %arg11[%c5_230, %c0_231, %c0_232], %309 {strides = array<i32>} : memref<8x16x4xbf16, #tpu.memory_space<vmem>>, vector<1x16x4xbf16>,
      %c5_233 = arith.constant 5 : index
      %c0_234 = arith.constant 0 : index
      %c0_235 = arith.constant 0 : index
      %310 = vector.load %arg6[%c5_233, %c0_234, %c0_235] : memref<8x32x4xbf16, #tpu.memory_space<vmem>>, vector<1x32x4xbf16>
      %311 = vector.shape_cast %310 : vector<1x32x4xbf16> to vector<32x4xbf16>
      %cst_236 = arith.constant dense<0.000000e+00> : vector<16x4xf32>
      %312 = tpu.matmul %232, %311, %cst_236 {dimension_numbers = #tpu.dot_dimension_numbers<[1], [0], [0], [1], [0, 0, 1, 1], [], []>} : vector<16x32xbf16>, vector<32x4xbf16>, vector<16x4xf32> -> vector<16x4xf32>
      %313 = arith.truncf %312 : vector<16x4xf32> to vector<16x4xbf16>
      %c5_237 = arith.constant 5 : index
      %c0_238 = arith.constant 0 : index
      %c0_239 = arith.constant 0 : index
      %314 = vector.load %arg12[%c5_237, %c0_238, %c0_239] : memref<8x16x4xbf16, #tpu.memory_space<vmem>>, vector<1x16x4xbf16>
      %315 = vector.shape_cast %314 : vector<1x16x4xbf16> to vector<16x4xbf16>
      %316 = vector.shape_cast %313 : vector<16x4xbf16> to vector<1x16x4xbf16>
      tpu.vector_store %arg12[%c5_237, %c0_238, %c0_239], %316 {strides = array<i32>} : memref<8x16x4xbf16, #tpu.memory_space<vmem>>, vector<1x16x4xbf16>,
      %c6_240 = arith.constant 6 : index
      %c0_241 = arith.constant 0 : index
      %c0_242 = arith.constant 0 : index
      %317 = vector.load %arg5[%c6_240, %c0_241, %c0_242] : memref<8x32x4xbf16, #tpu.memory_space<vmem>>, vector<1x32x4xbf16>
      %318 = vector.shape_cast %317 : vector<1x32x4xbf16> to vector<32x4xbf16>
      %cst_243 = arith.constant dense<0.000000e+00> : vector<16x4xf32>
      %319 = tpu.matmul %232, %318, %cst_243 {dimension_numbers = #tpu.dot_dimension_numbers<[1], [0], [0], [1], [0, 0, 1, 1], [], []>} : vector<16x32xbf16>, vector<32x4xbf16>, vector<16x4xf32> -> vector<16x4xf32>
      %320 = arith.truncf %319 : vector<16x4xf32> to vector<16x4xbf16>
      %c6_244 = arith.constant 6 : index
      %c0_245 = arith.constant 0 : index
      %c0_246 = arith.constant 0 : index
      %321 = vector.load %arg11[%c6_244, %c0_245, %c0_246] : memref<8x16x4xbf16, #tpu.memory_space<vmem>>, vector<1x16x4xbf16>
      %322 = vector.shape_cast %321 : vector<1x16x4xbf16> to vector<16x4xbf16>
      %323 = vector.shape_cast %320 : vector<16x4xbf16> to vector<1x16x4xbf16>
      tpu.vector_store %arg11[%c6_244, %c0_245, %c0_246], %323 {strides = array<i32>} : memref<8x16x4xbf16, #tpu.memory_space<vmem>>, vector<1x16x4xbf16>,
      %c6_247 = arith.constant 6 : index
      %c0_248 = arith.constant 0 : index
      %c0_249 = arith.constant 0 : index
      %324 = vector.load %arg6[%c6_247, %c0_248, %c0_249] : memref<8x32x4xbf16, #tpu.memory_space<vmem>>, vector<1x32x4xbf16>
      %325 = vector.shape_cast %324 : vector<1x32x4xbf16> to vector<32x4xbf16>
      %cst_250 = arith.constant dense<0.000000e+00> : vector<16x4xf32>
      %326 = tpu.matmul %232, %325, %cst_250 {dimension_numbers = #tpu.dot_dimension_numbers<[1], [0], [0], [1], [0, 0, 1, 1], [], []>} : vector<16x32xbf16>, vector<32x4xbf16>, vector<16x4xf32> -> vector<16x4xf32>
      %327 = arith.truncf %326 : vector<16x4xf32> to vector<16x4xbf16>
      %c6_251 = arith.constant 6 : index
      %c0_252 = arith.constant 0 : index
      %c0_253 = arith.constant 0 : index
      %328 = vector.load %arg12[%c6_251, %c0_252, %c0_253] : memref<8x16x4xbf16, #tpu.memory_space<vmem>>, vector<1x16x4xbf16>
      %329 = vector.shape_cast %328 : vector<1x16x4xbf16> to vector<16x4xbf16>
      %330 = vector.shape_cast %327 : vector<16x4xbf16> to vector<1x16x4xbf16>
      tpu.vector_store %arg12[%c6_251, %c0_252, %c0_253], %330 {strides = array<i32>} : memref<8x16x4xbf16, #tpu.memory_space<vmem>>, vector<1x16x4xbf16>,
      %c7_254 = arith.constant 7 : index
      %c0_255 = arith.constant 0 : index
      %c0_256 = arith.constant 0 : index
      %331 = vector.load %arg5[%c7_254, %c0_255, %c0_256] : memref<8x32x4xbf16, #tpu.memory_space<vmem>>, vector<1x32x4xbf16>
      %332 = vector.shape_cast %331 : vector<1x32x4xbf16> to vector<32x4xbf16>
      %cst_257 = arith.constant dense<0.000000e+00> : vector<16x4xf32>
      %333 = tpu.matmul %232, %332, %cst_257 {dimension_numbers = #tpu.dot_dimension_numbers<[1], [0], [0], [1], [0, 0, 1, 1], [], []>} : vector<16x32xbf16>, vector<32x4xbf16>, vector<16x4xf32> -> vector<16x4xf32>
      %334 = arith.truncf %333 : vector<16x4xf32> to vector<16x4xbf16>
      %c7_258 = arith.constant 7 : index
      %c0_259 = arith.constant 0 : index
      %c0_260 = arith.constant 0 : index
      %335 = vector.load %arg11[%c7_258, %c0_259, %c0_260] : memref<8x16x4xbf16, #tpu.memory_space<vmem>>, vector<1x16x4xbf16>
      %336 = vector.shape_cast %335 : vector<1x16x4xbf16> to vector<16x4xbf16>
      %337 = vector.shape_cast %334 : vector<16x4xbf16> to vector<1x16x4xbf16>
      tpu.vector_store %arg11[%c7_258, %c0_259, %c0_260], %337 {strides = array<i32>} : memref<8x16x4xbf16, #tpu.memory_space<vmem>>, vector<1x16x4xbf16>,
      %c7_261 = arith.constant 7 : index
      %c0_262 = arith.constant 0 : index
      %c0_263 = arith.constant 0 : index
      %338 = vector.load %arg6[%c7_261, %c0_262, %c0_263] : memref<8x32x4xbf16, #tpu.memory_space<vmem>>, vector<1x32x4xbf16>
      %339 = vector.shape_cast %338 : vector<1x32x4xbf16> to vector<32x4xbf16>
      %cst_264 = arith.constant dense<0.000000e+00> : vector<16x4xf32>
      %340 = tpu.matmul %232, %339, %cst_264 {dimension_numbers = #tpu.dot_dimension_numbers<[1], [0], [0], [1], [0, 0, 1, 1], [], []>} : vector<16x32xbf16>, vector<32x4xbf16>, vector<16x4xf32> -> vector<16x4xf32>
      %341 = arith.truncf %340 : vector<16x4xf32> to vector<16x4xbf16>
      %c7_265 = arith.constant 7 : index
      %c0_266 = arith.constant 0 : index
      %c0_267 = arith.constant 0 : index
      %342 = vector.load %arg12[%c7_265, %c0_266, %c0_267] : memref<8x16x4xbf16, #tpu.memory_space<vmem>>, vector<1x16x4xbf16>
      %343 = vector.shape_cast %342 : vector<1x16x4xbf16> to vector<16x4xbf16>
      %344 = vector.shape_cast %341 : vector<16x4xbf16> to vector<1x16x4xbf16>
      tpu.vector_store %arg12[%c7_265, %c0_266, %c0_267], %344 {strides = array<i32>} : memref<8x16x4xbf16, #tpu.memory_space<vmem>>, vector<1x16x4xbf16>,
      %cst_268 = arith.constant 0.000000e+00 : f32
      %345 = vector.broadcast %cst_268 : f32 to vector<1x32xf32>
      %c0_269 = arith.constant 0 : index
      %c0_270 = arith.constant 0 : index
      %c0_271 = arith.constant 0 : index
      %346 = vector.load %arg10[%c0_269, %c0_270, %c0_271] : memref<1x1x32xf32, #tpu.memory_space<vmem>>, vector<1x1x32xf32>
      %347 = vector.shape_cast %346 : vector<1x1x32xf32> to vector<1x32xf32>
      %348 = vector.shape_cast %345 : vector<1x32xf32> to vector<1x1x32xf32>
      tpu.vector_store %arg10[%c0_269, %c0_270, %c0_271], %348 {strides = array<i32>} : memref<1x1x32xf32, #tpu.memory_space<vmem>>, vector<1x1x32xf32>,
    } else {
    }
    %c0 = arith.constant 0 : index
    %c0_1 = arith.constant 0 : index
    %c0_2 = arith.constant 0 : index
    %3 = vector.load %arg2[%c0, %c0_1, %c0_2] : memref<1x8x32xbf16, #tpu.memory_space<vmem>>, vector<1x8x32xbf16>
    %4 = vector.shape_cast %3 : vector<1x8x32xbf16> to vector<8x32xbf16>
    %cst = arith.constant 0.000000e+00 : f32
    %5 = vector.broadcast %cst : f32 to vector<8x32xf32>
    %c0_3 = arith.constant 0 : index
    %c0_4 = arith.constant 0 : index
    %c0_5 = arith.constant 0 : index
    %6 = vector.load %arg4[%c0_3, %c0_4, %c0_5] : memref<8x32x4xbf16, #tpu.memory_space<vmem>>, vector<1x32x4xbf16>
    %7 = vector.shape_cast %6 : vector<1x32x4xbf16> to vector<32x4xbf16>
    %cst_6 = arith.constant dense<0.000000e+00> : vector<8x4xf32>
    %8 = tpu.matmul %4, %7, %cst_6 {dimension_numbers = #tpu.dot_dimension_numbers<[1], [0], [0], [1], [0, 0, 1, 1], [], []>} : vector<8x32xbf16>, vector<32x4xbf16>, vector<8x4xf32> -> vector<8x4xf32>
    %9 = arith.truncf %8 : vector<8x4xf32> to vector<8x4xbf16>
    %c0_7 = arith.constant 0 : index
    %c0_8 = arith.constant 0 : index
    %c0_9 = arith.constant 0 : index
    %10 = vector.load %arg11[%c0_7, %c0_8, %c0_9] : memref<8x16x4xbf16, #tpu.memory_space<vmem>>, vector<1x16x4xbf16>
    %11 = vector.shape_cast %10 : vector<1x16x4xbf16> to vector<16x4xbf16>
    %cst_10 = arith.constant dense<0.000000e+00> : vector<8x16xf32>
    %12 = tpu.matmul %9, %11, %cst_10 {dimension_numbers = #tpu.dot_dimension_numbers<[1], [1], [0], [0], [0, 0, 1, 0], [], []>} : vector<8x4xbf16>, vector<16x4xbf16>, vector<8x16xf32> -> vector<8x16xf32>
    %cst_11 = arith.constant dense<0xFF800000> : vector<8xf32>
    %13 = vector.multi_reduction <maximumf>, %12, %cst_11 [1] : vector<8x16xf32> to vector<8xf32>
    %14 = vector.shape_cast %13 : vector<8xf32> to vector<8x1xf32>
    %15 = vector.broadcast %14 : vector<8x1xf32> to vector<8x16xf32>
    %16 = arith.subf %12, %15 : vector<8x16xf32>
    %17 = math.exp %16 : vector<8x16xf32>
    %cst_12 = arith.constant dense<0.000000e+00> : vector<8xf32>
    %18 = vector.multi_reduction <add>, %17, %cst_12 [1] : vector<8x16xf32> to vector<8xf32>
    %19 = vector.shape_cast %18 : vector<8xf32> to vector<8x1xf32>
    %20 = tpu.reciprocal %19 {approx = true} : vector<8x1xf32> -> vector<8x1xf32>
    %21 = vector.broadcast %20 : vector<8x1xf32> to vector<8x16xf32>
    %22 = arith.mulf %17, %21 : vector<8x16xf32>
    %23 = arith.truncf %22 : vector<8x16xf32> to vector<8x16xbf16>
    %c0_13 = arith.constant 0 : index
    %c0_14 = arith.constant 0 : index
    %c0_15 = arith.constant 0 : index
    %24 = vector.load %arg12[%c0_13, %c0_14, %c0_15] : memref<8x16x4xbf16, #tpu.memory_space<vmem>>, vector<1x16x4xbf16>
    %25 = vector.shape_cast %24 : vector<1x16x4xbf16> to vector<16x4xbf16>
    %cst_16 = arith.constant dense<0.000000e+00> : vector<8x4xf32>
    %26 = tpu.matmul %23, %25, %cst_16 {dimension_numbers = #tpu.dot_dimension_numbers<[1], [0], [0], [1], [0, 0, 1, 1], [], []>} : vector<8x16xbf16>, vector<16x4xbf16>, vector<8x4xf32> -> vector<8x4xf32>
    %27 = arith.truncf %26 : vector<8x4xf32> to vector<8x4xbf16>
    %c0_17 = arith.constant 0 : index
    %c0_18 = arith.constant 0 : index
    %c0_19 = arith.constant 0 : index
    %28 = vector.load %arg7[%c0_17, %c0_18, %c0_19] : memref<8x4x32xbf16, #tpu.memory_space<vmem>>, vector<1x4x32xbf16>
    %29 = vector.shape_cast %28 : vector<1x4x32xbf16> to vector<4x32xbf16>
    %cst_20 = arith.constant dense<0.000000e+00> : vector<8x32xf32>
    %30 = tpu.matmul %27, %29, %cst_20 {dimension_numbers = #tpu.dot_dimension_numbers<[1], [0], [0], [1], [0, 0, 1, 1], [], []>} : vector<8x4xbf16>, vector<4x32xbf16>, vector<8x32xf32> -> vector<8x32xf32>
    %31 = arith.addf %5, %30 : vector<8x32xf32>
    %c1 = arith.constant 1 : index
    %c0_21 = arith.constant 0 : index
    %c0_22 = arith.constant 0 : index
    %32 = vector.load %arg4[%c1, %c0_21, %c0_22] : memref<8x32x4xbf16, #tpu.memory_space<vmem>>, vector<1x32x4xbf16>
    %33 = vector.shape_cast %32 : vector<1x32x4xbf16> to vector<32x4xbf16>
    %cst_23 = arith.constant dense<0.000000e+00> : vector<8x4xf32>
    %34 = tpu.matmul %4, %33, %cst_23 {dimension_numbers = #tpu.dot_dimension_numbers<[1], [0], [0], [1], [0, 0, 1, 1], [], []>} : vector<8x32xbf16>, vector<32x4xbf16>, vector<8x4xf32> -> vector<8x4xf32>
    %35 = arith.truncf %34 : vector<8x4xf32> to vector<8x4xbf16>
    %c1_24 = arith.constant 1 : index
    %c0_25 = arith.constant 0 : index
    %c0_26 = arith.constant 0 : index
    %36 = vector.load %arg11[%c1_24, %c0_25, %c0_26] : memref<8x16x4xbf16, #tpu.memory_space<vmem>>, vector<1x16x4xbf16>
    %37 = vector.shape_cast %36 : vector<1x16x4xbf16> to vector<16x4xbf16>
    %cst_27 = arith.constant dense<0.000000e+00> : vector<8x16xf32>
    %38 = tpu.matmul %35, %37, %cst_27 {dimension_numbers = #tpu.dot_dimension_numbers<[1], [1], [0], [0], [0, 0, 1, 0], [], []>} : vector<8x4xbf16>, vector<16x4xbf16>, vector<8x16xf32> -> vector<8x16xf32>
    %cst_28 = arith.constant dense<0xFF800000> : vector<8xf32>
    %39 = vector.multi_reduction <maximumf>, %38, %cst_28 [1] : vector<8x16xf32> to vector<8xf32>
    %40 = vector.shape_cast %39 : vector<8xf32> to vector<8x1xf32>
    %41 = vector.broadcast %40 : vector<8x1xf32> to vector<8x16xf32>
    %42 = arith.subf %38, %41 : vector<8x16xf32>
    %43 = math.exp %42 : vector<8x16xf32>
    %cst_29 = arith.constant dense<0.000000e+00> : vector<8xf32>
    %44 = vector.multi_reduction <add>, %43, %cst_29 [1] : vector<8x16xf32> to vector<8xf32>
    %45 = vector.shape_cast %44 : vector<8xf32> to vector<8x1xf32>
    %46 = tpu.reciprocal %45 {approx = true} : vector<8x1xf32> -> vector<8x1xf32>
    %47 = vector.broadcast %46 : vector<8x1xf32> to vector<8x16xf32>
    %48 = arith.mulf %43, %47 : vector<8x16xf32>
    %49 = arith.truncf %48 : vector<8x16xf32> to vector<8x16xbf16>
    %c1_30 = arith.constant 1 : index
    %c0_31 = arith.constant 0 : index
    %c0_32 = arith.constant 0 : index
    %50 = vector.load %arg12[%c1_30, %c0_31, %c0_32] : memref<8x16x4xbf16, #tpu.memory_space<vmem>>, vector<1x16x4xbf16>
    %51 = vector.shape_cast %50 : vector<1x16x4xbf16> to vector<16x4xbf16>
    %cst_33 = arith.constant dense<0.000000e+00> : vector<8x4xf32>
    %52 = tpu.matmul %49, %51, %cst_33 {dimension_numbers = #tpu.dot_dimension_numbers<[1], [0], [0], [1], [0, 0, 1, 1], [], []>} : vector<8x16xbf16>, vector<16x4xbf16>, vector<8x4xf32> -> vector<8x4xf32>
    %53 = arith.truncf %52 : vector<8x4xf32> to vector<8x4xbf16>
    %c1_34 = arith.constant 1 : index
    %c0_35 = arith.constant 0 : index
    %c0_36 = arith.constant 0 : index
    %54 = vector.load %arg7[%c1_34, %c0_35, %c0_36] : memref<8x4x32xbf16, #tpu.memory_space<vmem>>, vector<1x4x32xbf16>
    %55 = vector.shape_cast %54 : vector<1x4x32xbf16> to vector<4x32xbf16>
    %cst_37 = arith.constant dense<0.000000e+00> : vector<8x32xf32>
    %56 = tpu.matmul %53, %55, %cst_37 {dimension_numbers = #tpu.dot_dimension_numbers<[1], [0], [0], [1], [0, 0, 1, 1], [], []>} : vector<8x4xbf16>, vector<4x32xbf16>, vector<8x32xf32> -> vector<8x32xf32>
    %57 = arith.addf %31, %56 : vector<8x32xf32>
    %c2 = arith.constant 2 : index
    %c0_38 = arith.constant 0 : index
    %c0_39 = arith.constant 0 : index
    %58 = vector.load %arg4[%c2, %c0_38, %c0_39] : memref<8x32x4xbf16, #tpu.memory_space<vmem>>, vector<1x32x4xbf16>
    %59 = vector.shape_cast %58 : vector<1x32x4xbf16> to vector<32x4xbf16>
    %cst_40 = arith.constant dense<0.000000e+00> : vector<8x4xf32>
    %60 = tpu.matmul %4, %59, %cst_40 {dimension_numbers = #tpu.dot_dimension_numbers<[1], [0], [0], [1], [0, 0, 1, 1], [], []>} : vector<8x32xbf16>, vector<32x4xbf16>, vector<8x4xf32> -> vector<8x4xf32>
    %61 = arith.truncf %60 : vector<8x4xf32> to vector<8x4xbf16>
    %c2_41 = arith.constant 2 : index
    %c0_42 = arith.constant 0 : index
    %c0_43 = arith.constant 0 : index
    %62 = vector.load %arg11[%c2_41, %c0_42, %c0_43] : memref<8x16x4xbf16, #tpu.memory_space<vmem>>, vector<1x16x4xbf16>
    %63 = vector.shape_cast %62 : vector<1x16x4xbf16> to vector<16x4xbf16>
    %cst_44 = arith.constant dense<0.000000e+00> : vector<8x16xf32>
    %64 = tpu.matmul %61, %63, %cst_44 {dimension_numbers = #tpu.dot_dimension_numbers<[1], [1], [0], [0], [0, 0, 1, 0], [], []>} : vector<8x4xbf16>, vector<16x4xbf16>, vector<8x16xf32> -> vector<8x16xf32>
    %cst_45 = arith.constant dense<0xFF800000> : vector<8xf32>
    %65 = vector.multi_reduction <maximumf>, %64, %cst_45 [1] : vector<8x16xf32> to vector<8xf32>
    %66 = vector.shape_cast %65 : vector<8xf32> to vector<8x1xf32>
    %67 = vector.broadcast %66 : vector<8x1xf32> to vector<8x16xf32>
    %68 = arith.subf %64, %67 : vector<8x16xf32>
    %69 = math.exp %68 : vector<8x16xf32>
    %cst_46 = arith.constant dense<0.000000e+00> : vector<8xf32>
    %70 = vector.multi_reduction <add>, %69, %cst_46 [1] : vector<8x16xf32> to vector<8xf32>
    %71 = vector.shape_cast %70 : vector<8xf32> to vector<8x1xf32>
    %72 = tpu.reciprocal %71 {approx = true} : vector<8x1xf32> -> vector<8x1xf32>
    %73 = vector.broadcast %72 : vector<8x1xf32> to vector<8x16xf32>
    %74 = arith.mulf %69, %73 : vector<8x16xf32>
    %75 = arith.truncf %74 : vector<8x16xf32> to vector<8x16xbf16>
    %c2_47 = arith.constant 2 : index
    %c0_48 = arith.constant 0 : index
    %c0_49 = arith.constant 0 : index
    %76 = vector.load %arg12[%c2_47, %c0_48, %c0_49] : memref<8x16x4xbf16, #tpu.memory_space<vmem>>, vector<1x16x4xbf16>
    %77 = vector.shape_cast %76 : vector<1x16x4xbf16> to vector<16x4xbf16>
    %cst_50 = arith.constant dense<0.000000e+00> : vector<8x4xf32>
    %78 = tpu.matmul %75, %77, %cst_50 {dimension_numbers = #tpu.dot_dimension_numbers<[1], [0], [0], [1], [0, 0, 1, 1], [], []>} : vector<8x16xbf16>, vector<16x4xbf16>, vector<8x4xf32> -> vector<8x4xf32>
    %79 = arith.truncf %78 : vector<8x4xf32> to vector<8x4xbf16>
    %c2_51 = arith.constant 2 : index
    %c0_52 = arith.constant 0 : index
    %c0_53 = arith.constant 0 : index
    %80 = vector.load %arg7[%c2_51, %c0_52, %c0_53] : memref<8x4x32xbf16, #tpu.memory_space<vmem>>, vector<1x4x32xbf16>
    %81 = vector.shape_cast %80 : vector<1x4x32xbf16> to vector<4x32xbf16>
    %cst_54 = arith.constant dense<0.000000e+00> : vector<8x32xf32>
    %82 = tpu.matmul %79, %81, %cst_54 {dimension_numbers = #tpu.dot_dimension_numbers<[1], [0], [0], [1], [0, 0, 1, 1], [], []>} : vector<8x4xbf16>, vector<4x32xbf16>, vector<8x32xf32> -> vector<8x32xf32>
    %83 = arith.addf %57, %82 : vector<8x32xf32>
    %c3 = arith.constant 3 : index
    %c0_55 = arith.constant 0 : index
    %c0_56 = arith.constant 0 : index
    %84 = vector.load %arg4[%c3, %c0_55, %c0_56] : memref<8x32x4xbf16, #tpu.memory_space<vmem>>, vector<1x32x4xbf16>
    %85 = vector.shape_cast %84 : vector<1x32x4xbf16> to vector<32x4xbf16>
    %cst_57 = arith.constant dense<0.000000e+00> : vector<8x4xf32>
    %86 = tpu.matmul %4, %85, %cst_57 {dimension_numbers = #tpu.dot_dimension_numbers<[1], [0], [0], [1], [0, 0, 1, 1], [], []>} : vector<8x32xbf16>, vector<32x4xbf16>, vector<8x4xf32> -> vector<8x4xf32>
    %87 = arith.truncf %86 : vector<8x4xf32> to vector<8x4xbf16>
    %c3_58 = arith.constant 3 : index
    %c0_59 = arith.constant 0 : index
    %c0_60 = arith.constant 0 : index
    %88 = vector.load %arg11[%c3_58, %c0_59, %c0_60] : memref<8x16x4xbf16, #tpu.memory_space<vmem>>, vector<1x16x4xbf16>
    %89 = vector.shape_cast %88 : vector<1x16x4xbf16> to vector<16x4xbf16>
    %cst_61 = arith.constant dense<0.000000e+00> : vector<8x16xf32>
    %90 = tpu.matmul %87, %89, %cst_61 {dimension_numbers = #tpu.dot_dimension_numbers<[1], [1], [0], [0], [0, 0, 1, 0], [], []>} : vector<8x4xbf16>, vector<16x4xbf16>, vector<8x16xf32> -> vector<8x16xf32>
    %cst_62 = arith.constant dense<0xFF800000> : vector<8xf32>
    %91 = vector.multi_reduction <maximumf>, %90, %cst_62 [1] : vector<8x16xf32> to vector<8xf32>
    %92 = vector.shape_cast %91 : vector<8xf32> to vector<8x1xf32>
    %93 = vector.broadcast %92 : vector<8x1xf32> to vector<8x16xf32>
    %94 = arith.subf %90, %93 : vector<8x16xf32>
    %95 = math.exp %94 : vector<8x16xf32>
    %cst_63 = arith.constant dense<0.000000e+00> : vector<8xf32>
    %96 = vector.multi_reduction <add>, %95, %cst_63 [1] : vector<8x16xf32> to vector<8xf32>
    %97 = vector.shape_cast %96 : vector<8xf32> to vector<8x1xf32>
    %98 = tpu.reciprocal %97 {approx = true} : vector<8x1xf32> -> vector<8x1xf32>
    %99 = vector.broadcast %98 : vector<8x1xf32> to vector<8x16xf32>
    %100 = arith.mulf %95, %99 : vector<8x16xf32>
    %101 = arith.truncf %100 : vector<8x16xf32> to vector<8x16xbf16>
    %c3_64 = arith.constant 3 : index
    %c0_65 = arith.constant 0 : index
    %c0_66 = arith.constant 0 : index
    %102 = vector.load %arg12[%c3_64, %c0_65, %c0_66] : memref<8x16x4xbf16, #tpu.memory_space<vmem>>, vector<1x16x4xbf16>
    %103 = vector.shape_cast %102 : vector<1x16x4xbf16> to vector<16x4xbf16>
    %cst_67 = arith.constant dense<0.000000e+00> : vector<8x4xf32>
    %104 = tpu.matmul %101, %103, %cst_67 {dimension_numbers = #tpu.dot_dimension_numbers<[1], [0], [0], [1], [0, 0, 1, 1], [], []>} : vector<8x16xbf16>, vector<16x4xbf16>, vector<8x4xf32> -> vector<8x4xf32>
    %105 = arith.truncf %104 : vector<8x4xf32> to vector<8x4xbf16>
    %c3_68 = arith.constant 3 : index
    %c0_69 = arith.constant 0 : index
    %c0_70 = arith.constant 0 : index
    %106 = vector.load %arg7[%c3_68, %c0_69, %c0_70] : memref<8x4x32xbf16, #tpu.memory_space<vmem>>, vector<1x4x32xbf16>
    %107 = vector.shape_cast %106 : vector<1x4x32xbf16> to vector<4x32xbf16>
    %cst_71 = arith.constant dense<0.000000e+00> : vector<8x32xf32>
    %108 = tpu.matmul %105, %107, %cst_71 {dimension_numbers = #tpu.dot_dimension_numbers<[1], [0], [0], [1], [0, 0, 1, 1], [], []>} : vector<8x4xbf16>, vector<4x32xbf16>, vector<8x32xf32> -> vector<8x32xf32>
    %109 = arith.addf %83, %108 : vector<8x32xf32>
    %c4 = arith.constant 4 : index
    %c0_72 = arith.constant 0 : index
    %c0_73 = arith.constant 0 : index
    %110 = vector.load %arg4[%c4, %c0_72, %c0_73] : memref<8x32x4xbf16, #tpu.memory_space<vmem>>, vector<1x32x4xbf16>
    %111 = vector.shape_cast %110 : vector<1x32x4xbf16> to vector<32x4xbf16>
    %cst_74 = arith.constant dense<0.000000e+00> : vector<8x4xf32>
    %112 = tpu.matmul %4, %111, %cst_74 {dimension_numbers = #tpu.dot_dimension_numbers<[1], [0], [0], [1], [0, 0, 1, 1], [], []>} : vector<8x32xbf16>, vector<32x4xbf16>, vector<8x4xf32> -> vector<8x4xf32>
    %113 = arith.truncf %112 : vector<8x4xf32> to vector<8x4xbf16>
    %c4_75 = arith.constant 4 : index
    %c0_76 = arith.constant 0 : index
    %c0_77 = arith.constant 0 : index
    %114 = vector.load %arg11[%c4_75, %c0_76, %c0_77] : memref<8x16x4xbf16, #tpu.memory_space<vmem>>, vector<1x16x4xbf16>
    %115 = vector.shape_cast %114 : vector<1x16x4xbf16> to vector<16x4xbf16>
    %cst_78 = arith.constant dense<0.000000e+00> : vector<8x16xf32>
    %116 = tpu.matmul %113, %115, %cst_78 {dimension_numbers = #tpu.dot_dimension_numbers<[1], [1], [0], [0], [0, 0, 1, 0], [], []>} : vector<8x4xbf16>, vector<16x4xbf16>, vector<8x16xf32> -> vector<8x16xf32>
    %cst_79 = arith.constant dense<0xFF800000> : vector<8xf32>
    %117 = vector.multi_reduction <maximumf>, %116, %cst_79 [1] : vector<8x16xf32> to vector<8xf32>
    %118 = vector.shape_cast %117 : vector<8xf32> to vector<8x1xf32>
    %119 = vector.broadcast %118 : vector<8x1xf32> to vector<8x16xf32>
    %120 = arith.subf %116, %119 : vector<8x16xf32>
    %121 = math.exp %120 : vector<8x16xf32>
    %cst_80 = arith.constant dense<0.000000e+00> : vector<8xf32>
    %122 = vector.multi_reduction <add>, %121, %cst_80 [1] : vector<8x16xf32> to vector<8xf32>
    %123 = vector.shape_cast %122 : vector<8xf32> to vector<8x1xf32>
    %124 = tpu.reciprocal %123 {approx = true} : vector<8x1xf32> -> vector<8x1xf32>
    %125 = vector.broadcast %124 : vector<8x1xf32> to vector<8x16xf32>
    %126 = arith.mulf %121, %125 : vector<8x16xf32>
    %127 = arith.truncf %126 : vector<8x16xf32> to vector<8x16xbf16>
    %c4_81 = arith.constant 4 : index
    %c0_82 = arith.constant 0 : index
    %c0_83 = arith.constant 0 : index
    %128 = vector.load %arg12[%c4_81, %c0_82, %c0_83] : memref<8x16x4xbf16, #tpu.memory_space<vmem>>, vector<1x16x4xbf16>
    %129 = vector.shape_cast %128 : vector<1x16x4xbf16> to vector<16x4xbf16>
    %cst_84 = arith.constant dense<0.000000e+00> : vector<8x4xf32>
    %130 = tpu.matmul %127, %129, %cst_84 {dimension_numbers = #tpu.dot_dimension_numbers<[1], [0], [0], [1], [0, 0, 1, 1], [], []>} : vector<8x16xbf16>, vector<16x4xbf16>, vector<8x4xf32> -> vector<8x4xf32>
    %131 = arith.truncf %130 : vector<8x4xf32> to vector<8x4xbf16>
    %c4_85 = arith.constant 4 : index
    %c0_86 = arith.constant 0 : index
    %c0_87 = arith.constant 0 : index
    %132 = vector.load %arg7[%c4_85, %c0_86, %c0_87] : memref<8x4x32xbf16, #tpu.memory_space<vmem>>, vector<1x4x32xbf16>
    %133 = vector.shape_cast %132 : vector<1x4x32xbf16> to vector<4x32xbf16>
    %cst_88 = arith.constant dense<0.000000e+00> : vector<8x32xf32>
    %134 = tpu.matmul %131, %133, %cst_88 {dimension_numbers = #tpu.dot_dimension_numbers<[1], [0], [0], [1], [0, 0, 1, 1], [], []>} : vector<8x4xbf16>, vector<4x32xbf16>, vector<8x32xf32> -> vector<8x32xf32>
    %135 = arith.addf %109, %134 : vector<8x32xf32>
    %c5 = arith.constant 5 : index
    %c0_89 = arith.constant 0 : index
    %c0_90 = arith.constant 0 : index
    %136 = vector.load %arg4[%c5, %c0_89, %c0_90] : memref<8x32x4xbf16, #tpu.memory_space<vmem>>, vector<1x32x4xbf16>
    %137 = vector.shape_cast %136 : vector<1x32x4xbf16> to vector<32x4xbf16>
    %cst_91 = arith.constant dense<0.000000e+00> : vector<8x4xf32>
    %138 = tpu.matmul %4, %137, %cst_91 {dimension_numbers = #tpu.dot_dimension_numbers<[1], [0], [0], [1], [0, 0, 1, 1], [], []>} : vector<8x32xbf16>, vector<32x4xbf16>, vector<8x4xf32> -> vector<8x4xf32>
    %139 = arith.truncf %138 : vector<8x4xf32> to vector<8x4xbf16>
    %c5_92 = arith.constant 5 : index
    %c0_93 = arith.constant 0 : index
    %c0_94 = arith.constant 0 : index
    %140 = vector.load %arg11[%c5_92, %c0_93, %c0_94] : memref<8x16x4xbf16, #tpu.memory_space<vmem>>, vector<1x16x4xbf16>
    %141 = vector.shape_cast %140 : vector<1x16x4xbf16> to vector<16x4xbf16>
    %cst_95 = arith.constant dense<0.000000e+00> : vector<8x16xf32>
    %142 = tpu.matmul %139, %141, %cst_95 {dimension_numbers = #tpu.dot_dimension_numbers<[1], [1], [0], [0], [0, 0, 1, 0], [], []>} : vector<8x4xbf16>, vector<16x4xbf16>, vector<8x16xf32> -> vector<8x16xf32>
    %cst_96 = arith.constant dense<0xFF800000> : vector<8xf32>
    %143 = vector.multi_reduction <maximumf>, %142, %cst_96 [1] : vector<8x16xf32> to vector<8xf32>
    %144 = vector.shape_cast %143 : vector<8xf32> to vector<8x1xf32>
    %145 = vector.broadcast %144 : vector<8x1xf32> to vector<8x16xf32>
    %146 = arith.subf %142, %145 : vector<8x16xf32>
    %147 = math.exp %146 : vector<8x16xf32>
    %cst_97 = arith.constant dense<0.000000e+00> : vector<8xf32>
    %148 = vector.multi_reduction <add>, %147, %cst_97 [1] : vector<8x16xf32> to vector<8xf32>
    %149 = vector.shape_cast %148 : vector<8xf32> to vector<8x1xf32>
    %150 = tpu.reciprocal %149 {approx = true} : vector<8x1xf32> -> vector<8x1xf32>
    %151 = vector.broadcast %150 : vector<8x1xf32> to vector<8x16xf32>
    %152 = arith.mulf %147, %151 : vector<8x16xf32>
    %153 = arith.truncf %152 : vector<8x16xf32> to vector<8x16xbf16>
    %c5_98 = arith.constant 5 : index
    %c0_99 = arith.constant 0 : index
    %c0_100 = arith.constant 0 : index
    %154 = vector.load %arg12[%c5_98, %c0_99, %c0_100] : memref<8x16x4xbf16, #tpu.memory_space<vmem>>, vector<1x16x4xbf16>
    %155 = vector.shape_cast %154 : vector<1x16x4xbf16> to vector<16x4xbf16>
    %cst_101 = arith.constant dense<0.000000e+00> : vector<8x4xf32>
    %156 = tpu.matmul %153, %155, %cst_101 {dimension_numbers = #tpu.dot_dimension_numbers<[1], [0], [0], [1], [0, 0, 1, 1], [], []>} : vector<8x16xbf16>, vector<16x4xbf16>, vector<8x4xf32> -> vector<8x4xf32>
    %157 = arith.truncf %156 : vector<8x4xf32> to vector<8x4xbf16>
    %c5_102 = arith.constant 5 : index
    %c0_103 = arith.constant 0 : index
    %c0_104 = arith.constant 0 : index
    %158 = vector.load %arg7[%c5_102, %c0_103, %c0_104] : memref<8x4x32xbf16, #tpu.memory_space<vmem>>, vector<1x4x32xbf16>
    %159 = vector.shape_cast %158 : vector<1x4x32xbf16> to vector<4x32xbf16>
    %cst_105 = arith.constant dense<0.000000e+00> : vector<8x32xf32>
    %160 = tpu.matmul %157, %159, %cst_105 {dimension_numbers = #tpu.dot_dimension_numbers<[1], [0], [0], [1], [0, 0, 1, 1], [], []>} : vector<8x4xbf16>, vector<4x32xbf16>, vector<8x32xf32> -> vector<8x32xf32>
    %161 = arith.addf %135, %160 : vector<8x32xf32>
    %c6 = arith.constant 6 : index
    %c0_106 = arith.constant 0 : index
    %c0_107 = arith.constant 0 : index
    %162 = vector.load %arg4[%c6, %c0_106, %c0_107] : memref<8x32x4xbf16, #tpu.memory_space<vmem>>, vector<1x32x4xbf16>
    %163 = vector.shape_cast %162 : vector<1x32x4xbf16> to vector<32x4xbf16>
    %cst_108 = arith.constant dense<0.000000e+00> : vector<8x4xf32>
    %164 = tpu.matmul %4, %163, %cst_108 {dimension_numbers = #tpu.dot_dimension_numbers<[1], [0], [0], [1], [0, 0, 1, 1], [], []>} : vector<8x32xbf16>, vector<32x4xbf16>, vector<8x4xf32> -> vector<8x4xf32>
    %165 = arith.truncf %164 : vector<8x4xf32> to vector<8x4xbf16>
    %c6_109 = arith.constant 6 : index
    %c0_110 = arith.constant 0 : index
    %c0_111 = arith.constant 0 : index
    %166 = vector.load %arg11[%c6_109, %c0_110, %c0_111] : memref<8x16x4xbf16, #tpu.memory_space<vmem>>, vector<1x16x4xbf16>
    %167 = vector.shape_cast %166 : vector<1x16x4xbf16> to vector<16x4xbf16>
    %cst_112 = arith.constant dense<0.000000e+00> : vector<8x16xf32>
    %168 = tpu.matmul %165, %167, %cst_112 {dimension_numbers = #tpu.dot_dimension_numbers<[1], [1], [0], [0], [0, 0, 1, 0], [], []>} : vector<8x4xbf16>, vector<16x4xbf16>, vector<8x16xf32> -> vector<8x16xf32>
    %cst_113 = arith.constant dense<0xFF800000> : vector<8xf32>
    %169 = vector.multi_reduction <maximumf>, %168, %cst_113 [1] : vector<8x16xf32> to vector<8xf32>
    %170 = vector.shape_cast %169 : vector<8xf32> to vector<8x1xf32>
    %171 = vector.broadcast %170 : vector<8x1xf32> to vector<8x16xf32>
    %172 = arith.subf %168, %171 : vector<8x16xf32>
    %173 = math.exp %172 : vector<8x16xf32>
    %cst_114 = arith.constant dense<0.000000e+00> : vector<8xf32>
    %174 = vector.multi_reduction <add>, %173, %cst_114 [1] : vector<8x16xf32> to vector<8xf32>
    %175 = vector.shape_cast %174 : vector<8xf32> to vector<8x1xf32>
    %176 = tpu.reciprocal %175 {approx = true} : vector<8x1xf32> -> vector<8x1xf32>
    %177 = vector.broadcast %176 : vector<8x1xf32> to vector<8x16xf32>
    %178 = arith.mulf %173, %177 : vector<8x16xf32>
    %179 = arith.truncf %178 : vector<8x16xf32> to vector<8x16xbf16>
    %c6_115 = arith.constant 6 : index
    %c0_116 = arith.constant 0 : index
    %c0_117 = arith.constant 0 : index
    %180 = vector.load %arg12[%c6_115, %c0_116, %c0_117] : memref<8x16x4xbf16, #tpu.memory_space<vmem>>, vector<1x16x4xbf16>
    %181 = vector.shape_cast %180 : vector<1x16x4xbf16> to vector<16x4xbf16>
    %cst_118 = arith.constant dense<0.000000e+00> : vector<8x4xf32>
    %182 = tpu.matmul %179, %181, %cst_118 {dimension_numbers = #tpu.dot_dimension_numbers<[1], [0], [0], [1], [0, 0, 1, 1], [], []>} : vector<8x16xbf16>, vector<16x4xbf16>, vector<8x4xf32> -> vector<8x4xf32>
    %183 = arith.truncf %182 : vector<8x4xf32> to vector<8x4xbf16>
    %c6_119 = arith.constant 6 : index
    %c0_120 = arith.constant 0 : index
    %c0_121 = arith.constant 0 : index
    %184 = vector.load %arg7[%c6_119, %c0_120, %c0_121] : memref<8x4x32xbf16, #tpu.memory_space<vmem>>, vector<1x4x32xbf16>
    %185 = vector.shape_cast %184 : vector<1x4x32xbf16> to vector<4x32xbf16>
    %cst_122 = arith.constant dense<0.000000e+00> : vector<8x32xf32>
    %186 = tpu.matmul %183, %185, %cst_122 {dimension_numbers = #tpu.dot_dimension_numbers<[1], [0], [0], [1], [0, 0, 1, 1], [], []>} : vector<8x4xbf16>, vector<4x32xbf16>, vector<8x32xf32> -> vector<8x32xf32>
    %187 = arith.addf %161, %186 : vector<8x32xf32>
    %c7 = arith.constant 7 : index
    %c0_123 = arith.constant 0 : index
    %c0_124 = arith.constant 0 : index
    %188 = vector.load %arg4[%c7, %c0_123, %c0_124] : memref<8x32x4xbf16, #tpu.memory_space<vmem>>, vector<1x32x4xbf16>
    %189 = vector.shape_cast %188 : vector<1x32x4xbf16> to vector<32x4xbf16>
    %cst_125 = arith.constant dense<0.000000e+00> : vector<8x4xf32>
    %190 = tpu.matmul %4, %189, %cst_125 {dimension_numbers = #tpu.dot_dimension_numbers<[1], [0], [0], [1], [0, 0, 1, 1], [], []>} : vector<8x32xbf16>, vector<32x4xbf16>, vector<8x4xf32> -> vector<8x4xf32>
    %191 = arith.truncf %190 : vector<8x4xf32> to vector<8x4xbf16>
    %c7_126 = arith.constant 7 : index
    %c0_127 = arith.constant 0 : index
    %c0_128 = arith.constant 0 : index
    %192 = vector.load %arg11[%c7_126, %c0_127, %c0_128] : memref<8x16x4xbf16, #tpu.memory_space<vmem>>, vector<1x16x4xbf16>
    %193 = vector.shape_cast %192 : vector<1x16x4xbf16> to vector<16x4xbf16>
    %cst_129 = arith.constant dense<0.000000e+00> : vector<8x16xf32>
    %194 = tpu.matmul %191, %193, %cst_129 {dimension_numbers = #tpu.dot_dimension_numbers<[1], [1], [0], [0], [0, 0, 1, 0], [], []>} : vector<8x4xbf16>, vector<16x4xbf16>, vector<8x16xf32> -> vector<8x16xf32>
    %cst_130 = arith.constant dense<0xFF800000> : vector<8xf32>
    %195 = vector.multi_reduction <maximumf>, %194, %cst_130 [1] : vector<8x16xf32> to vector<8xf32>
    %196 = vector.shape_cast %195 : vector<8xf32> to vector<8x1xf32>
    %197 = vector.broadcast %196 : vector<8x1xf32> to vector<8x16xf32>
    %198 = arith.subf %194, %197 : vector<8x16xf32>
    %199 = math.exp %198 : vector<8x16xf32>
    %cst_131 = arith.constant dense<0.000000e+00> : vector<8xf32>
    %200 = vector.multi_reduction <add>, %199, %cst_131 [1] : vector<8x16xf32> to vector<8xf32>
    %201 = vector.shape_cast %200 : vector<8xf32> to vector<8x1xf32>
    %202 = tpu.reciprocal %201 {approx = true} : vector<8x1xf32> -> vector<8x1xf32>
    %203 = vector.broadcast %202 : vector<8x1xf32> to vector<8x16xf32>
    %204 = arith.mulf %199, %203 : vector<8x16xf32>
    %205 = arith.truncf %204 : vector<8x16xf32> to vector<8x16xbf16>
    %c7_132 = arith.constant 7 : index
    %c0_133 = arith.constant 0 : index
    %c0_134 = arith.constant 0 : index
    %206 = vector.load %arg12[%c7_132, %c0_133, %c0_134] : memref<8x16x4xbf16, #tpu.memory_space<vmem>>, vector<1x16x4xbf16>
    %207 = vector.shape_cast %206 : vector<1x16x4xbf16> to vector<16x4xbf16>
    %cst_135 = arith.constant dense<0.000000e+00> : vector<8x4xf32>
    %208 = tpu.matmul %205, %207, %cst_135 {dimension_numbers = #tpu.dot_dimension_numbers<[1], [0], [0], [1], [0, 0, 1, 1], [], []>} : vector<8x16xbf16>, vector<16x4xbf16>, vector<8x4xf32> -> vector<8x4xf32>
    %209 = arith.truncf %208 : vector<8x4xf32> to vector<8x4xbf16>
    %c7_136 = arith.constant 7 : index
    %c0_137 = arith.constant 0 : index
    %c0_138 = arith.constant 0 : index
    %210 = vector.load %arg7[%c7_136, %c0_137, %c0_138] : memref<8x4x32xbf16, #tpu.memory_space<vmem>>, vector<1x4x32xbf16>
    %211 = vector.shape_cast %210 : vector<1x4x32xbf16> to vector<4x32xbf16>
    %cst_139 = arith.constant dense<0.000000e+00> : vector<8x32xf32>
    %212 = tpu.matmul %209, %211, %cst_139 {dimension_numbers = #tpu.dot_dimension_numbers<[1], [0], [0], [1], [0, 0, 1, 1], [], []>} : vector<8x4xbf16>, vector<4x32xbf16>, vector<8x32xf32> -> vector<8x32xf32>
    %213 = arith.addf %187, %212 : vector<8x32xf32>
    %c0_140 = arith.constant 0 : index
    %c0_141 = arith.constant 0 : index
    %214 = vector.load %arg8[%c0_140, %c0_141] : memref<1x32xf32, #tpu.memory_space<vmem>>, vector<1x32xf32>
    %215 = vector.broadcast %214 : vector<1x32xf32> to vector<8x32xf32>
    %216 = arith.addf %213, %215 : vector<8x32xf32>
    %c0_142 = arith.constant 0 : index
    %c0_143 = arith.constant 0 : index
    %c0_144 = arith.constant 0 : index
    %217 = vector.load %arg9[%c0_142, %c0_143, %c0_144] : memref<1x8x32xf32, #tpu.memory_space<vmem>>, vector<1x8x32xf32>
    %218 = vector.shape_cast %217 : vector<1x8x32xf32> to vector<8x32xf32>
    %219 = vector.shape_cast %216 : vector<8x32xf32> to vector<1x8x32xf32>
    tpu.vector_store %arg9[%c0_142, %c0_143, %c0_144], %219 {strides = array<i32>} : memref<1x8x32xf32, #tpu.memory_space<vmem>>, vector<1x8x32xf32>,
    %c0_145 = arith.constant 0 : index
    %c0_146 = arith.constant 0 : index
    %c0_147 = arith.constant 0 : index
    %220 = vector.load %arg10[%c0_145, %c0_146, %c0_147] : memref<1x1x32xf32, #tpu.memory_space<vmem>>, vector<1x1x32xf32>
    %221 = vector.shape_cast %220 : vector<1x1x32xf32> to vector<1x32xf32>
    %cst_148 = arith.constant dense<0.000000e+00> : vector<32xf32>
    %222 = vector.multi_reduction <add>, %216, %cst_148 [0] : vector<8x32xf32> to vector<32xf32>
    %223 = vector.shape_cast %222 : vector<32xf32> to vector<1x32xf32>
    %224 = arith.addf %221, %223 : vector<1x32xf32>
    %c0_149 = arith.constant 0 : index
    %c0_150 = arith.constant 0 : index
    %c0_151 = arith.constant 0 : index
    %225 = vector.load %arg10[%c0_149, %c0_150, %c0_151] : memref<1x1x32xf32, #tpu.memory_space<vmem>>, vector<1x1x32xf32>
    %226 = vector.shape_cast %225 : vector<1x1x32xf32> to vector<1x32xf32>
    %227 = vector.shape_cast %224 : vector<1x32xf32> to vector<1x1x32xf32>
    tpu.vector_store %arg10[%c0_149, %c0_150, %c0_151], %227 {strides = array<i32>} : memref<1x1x32xf32, #tpu.memory_space<vmem>>, vector<1x1x32xf32>,
    %c1_i32 = arith.constant 1 : i32
    %228 = arith.cmpi eq, %arg1, %c1_i32 : i32
    %229 = arith.extui %228 : i1 to i32
    %c0_i32_152 = arith.constant 0 : i32
    %230 = arith.cmpi ne, %229, %c0_i32_152 : i32
    scf.if %230 {
      %c0_153 = arith.constant 0 : index
      %c0_154 = arith.constant 0 : index
      %c0_155 = arith.constant 0 : index
      %231 = vector.load %arg10[%c0_153, %c0_154, %c0_155] : memref<1x1x32xf32, #tpu.memory_space<vmem>>, vector<1x1x32xf32>
      %232 = vector.shape_cast %231 : vector<1x1x32xf32> to vector<1x32xf32>
      %cst_156 = arith.constant 6.250000e-02 : f32
      %233 = vector.broadcast %cst_156 : f32 to vector<1x32xf32>
      %234 = arith.mulf %232, %233 : vector<1x32xf32>
      %c0_157 = arith.constant 0 : index
      %c0_158 = arith.constant 0 : index
      %c0_159 = arith.constant 0 : index
      %235 = vector.load %arg10[%c0_157, %c0_158, %c0_159] : memref<1x1x32xf32, #tpu.memory_space<vmem>>, vector<1x1x32xf32>
      %236 = vector.shape_cast %235 : vector<1x1x32xf32> to vector<1x32xf32>
      %237 = vector.shape_cast %234 : vector<1x32xf32> to vector<1x1x32xf32>
      tpu.vector_store %arg10[%c0_157, %c0_158, %c0_159], %237 {strides = array<i32>} : memref<1x1x32xf32, #tpu.memory_space<vmem>>, vector<1x1x32xf32>,
    } else {
    }
    return
  }
  func.func @transform_0(%arg0: i32, %arg1: i32) -> (i32, i32, i32) {
    %c0_i32 = arith.constant 0 : i32
    %c0_i32_0 = arith.constant 0 : i32
    return %arg0, %arg1, %c0_i32 : i32, i32, i32
  }
  func.func @transform_1(%arg0: i32, %arg1: i32) -> (i32, i32, i32) {
    %c0_i32 = arith.constant 0 : i32
    %c0_i32_0 = arith.constant 0 : i32
    %c0_i32_1 = arith.constant 0 : i32
    return %arg0, %c0_i32, %c0_i32_0 : i32, i32, i32
  }
  func.func @transform_2(%arg0: i32, %arg1: i32) -> (i32, i32, i32) {
    %c0_i32 = arith.constant 0 : i32
    %c0_i32_0 = arith.constant 0 : i32
    %c0_i32_1 = arith.constant 0 : i32
    %c0_i32_2 = arith.constant 0 : i32
    return %c0_i32, %c0_i32_0, %c0_i32_1 : i32, i32, i32
  }
  func.func @transform_3(%arg0: i32, %arg1: i32) -> (i32, i32, i32) {
    %c0_i32 = arith.constant 0 : i32
    %c0_i32_0 = arith.constant 0 : i32
    %c0_i32_1 = arith.constant 0 : i32
    %c0_i32_2 = arith.constant 0 : i32
    return %c0_i32, %c0_i32_0, %c0_i32_1 : i32, i32, i32
  }
  func.func @transform_4(%arg0: i32, %arg1: i32) -> (i32, i32, i32) {
    %c0_i32 = arith.constant 0 : i32
    %c0_i32_0 = arith.constant 0 : i32
    %c0_i32_1 = arith.constant 0 : i32
    %c0_i32_2 = arith.constant 0 : i32
    return %c0_i32, %c0_i32_0, %c0_i32_1 : i32, i32, i32
  }
  func.func @transform_5(%arg0: i32, %arg1: i32) -> (i32, i32, i32) {
    %c0_i32 = arith.constant 0 : i32
    %c0_i32_0 = arith.constant 0 : i32
    %c0_i32_1 = arith.constant 0 : i32
    %c0_i32_2 = arith.constant 0 : i32
    return %c0_i32, %c0_i32_0, %c0_i32_1 : i32, i32, i32
  }
  func.func @transform_6(%arg0: i32, %arg1: i32) -> (i32, i32) {
    %c0_i32 = arith.constant 0 : i32
    %c0_i32_0 = arith.constant 0 : i32
    %c0_i32_1 = arith.constant 0 : i32
    return %c0_i32, %c0_i32_0 : i32, i32
  }
  func.func @transform_7(%arg0: i32, %arg1: i32) -> (i32, i32, i32) {
    %c0_i32 = arith.constant 0 : i32
    %c0_i32_0 = arith.constant 0 : i32
    return %arg0, %arg1, %c0_i32 : i32, i32, i32
  }
  func.func @transform_8(%arg0: i32, %arg1: i32) -> (i32, i32, i32) {
    %c0_i32 = arith.constant 0 : i32
    %c0_i32_0 = arith.constant 0 : i32
    %c0_i32_1 = arith.constant 0 : i32
    return %arg0, %c0_i32, %c0_i32_0 : i32, i32, i32
  }
}

</mosaic_0001>

<bundles_post_ra>
// kernel: tpu_custom_call.1
= control target key start
LH: loop header
LB: loop body
LE: loop exit
PB: predicated region body
PF: predicated region fallthrough
CT: control target
= control target key end

     0   :  { %s5489_s0 = inlined_call_operand.hbm [shape: bf16[2,16,32], index: 0, kind: input, shape index: {}]   ;;  %s5490_s1 = inlined_call_operand.hbm [shape: bf16[2,16,32], index: 1, kind: input, shape index: {}]   ;;  %s5491_s2 = inlined_call_operand.hbm [shape: bf16[8,32,4], index: 2, kind: input, shape index: {}]   ;;  %s5492_s3 = inlined_call_operand.hbm [shape: bf16[8,32,4], index: 3, kind: input, shape index: {}]   ;;  %s5493_s4 = inlined_call_operand.hbm [shape: bf16[8,32,4], index: 4, kind: input, shape index: {}]   ;;  %s5494_s5 = inlined_call_operand.hbm [shape: bf16[8,4,32], index: 5, kind: input, shape index: {}]   ;;  %s5495_s6 = inlined_call_operand.hbm [shape: f32[1,32], index: 6, kind: input, shape index: {}]   ;;  %s5496_s7 = inlined_call_operand.hbm [shape: f32[2,16,32], index: 7, kind: output, shape index: {0}]   ;;  %s5497_s8 = inlined_call_operand.hbm [shape: f32[2,1,32], index: 8, kind: output, shape index: {1}]  }
   0x1   :  { %5520 = sst [smem:[#allocation35_spill]] %s5489_s0 }
   0x2   :  { %5521 = sst [smem:[#allocation36_spill]] %s5490_s1 }
   0x3   :  { %5522 = sst [smem:[#allocation37_spill]] %s5491_s2 }
   0x4   :  { %5523 = sst [smem:[#allocation38_spill]] %s5492_s3 }
   0x5   :  { %5524 = sst [smem:[#allocation39_spill]] %s5493_s4 }
   0x6   :  { %5525 = sst [smem:[#allocation40_spill]] %s5494_s5 }
   0x7   :  { %5526 = sst [smem:[#allocation41_spill]] %s5495_s6 }
   0x8   :  { %5527 = sst [smem:[#allocation42_spill]] %s5496_s7 }
   0x9   :  { %5528 = sst [smem:[#allocation43_spill]] %s5497_s8 }
   0xa   :  { %14 = vsyncpa [#allocation5], 0 }
   0xb   :  { %16 = vsyncpa [#allocation5 + $0x1], 0 }
   0xc   :  { %17 = vsyncpa [#allocation8], 0 }
   0xd   :  { %19 = vsyncpa [#allocation8 + $0x1], 0 }
   0xe   :  { %20 = vsyncpa [#allocation11], 0 }
   0xf   :  { %21 = vsyncpa [#allocation14], 0 }
  0x10   :  { %22 = vsyncpa [#allocation6], 0 }
  0x11   :  { %24 = vsyncpa [#allocation6 + $0x1], 0 }
  0x12   :  { %25 = vsyncpa [#allocation18], 0 }
  0x13   :  { %27 = vsyncpa [#allocation18 + $0x1], 0  ;;  %s4672_s27 = smov 0   ;;  %s4674_s28 = smov 0  }
  0x14   :  { %s4676_s29 = smov 0   ;;  %s4678_s30 = smov 0  }
  0x15   :  { %s4680_s9 = smov 0   ;;  %s4682_s10 = smov 0  }
  0x16   :  { %s4684_s11 = smov 0   ;;  %s4686_s12 = smov 0  }
  0x17   :  { %s4688_s13 = smov 0   ;;  %s4690_s14 = smov 0  }
  0x18   :  { %s4692_s15 = smov 0  }
  0x19 LB: > { %5529 = sst [smem:[#allocation26_spill]] %s4588_s10  ;;  %s4728_s16 = sadd.s32 4294967295, %s4608_s15   ;;  %s4608_s15 = sphi %s4692_s15, %s33_s15   ;;  %s4604_s14 = sphi %s4690_s14, %s5597_s14   ;;  %s4600_s13 = sphi %s4688_s13, %s5589_s13   ;;  %s4596_s12 = sphi %s4686_s12, %s5596_s12   ;;  %s4592_s11 = sphi %s4684_s11, %s5588_s11   ;;  %s4588_s10 = sphi %s4682_s10, %s5587_s10   ;;  %s4584_s9 = sphi %s4680_s9, %s5595_s9   ;;  %s4580_s30 = sphi %s4678_s30, %s5594_s30   ;;  %s4576_s29 = sphi %s4676_s29, %s5593_s29   ;;  %s4572_s28 = sphi %s4674_s28, %s5592_s28   ;;  %s4568_s27 = sphi %s4672_s27, %s5591_s27  }
  0x1a   : > { %5530 = sst [smem:[#allocation27_spill]] %s4592_s11  ;;  %p3401_p0 = scmp.ge.s32.totalorder %s4608_s15, 1 }
  0x1b   : > { %5531 = sst [smem:[#allocation28_spill]] %s4596_s12  ;;  %p5504_p1 = scmp.eq.s32.totalorder %s4728_s16, 0 }
  0x1c   : > { %5532 = sst [smem:[#allocation29_spill]] %s4600_s13  ;;  %p263_p2 = scmp.lt.s32.totalorder %s4608_s15, 5 }
  0x1d   : > { %s4610_s18 = smov [#allocation9]   ;;  %s4611_s21 = smov [#allocation10]  }
  0x1e   : > { %p4733_p3 = pnand %p3401_p0, %p263_p2  ;;  %s275_s19 = sshll.u32 %s4610_s18, 4  ;;  %s4737_s19 = int_to_ptr.vmem [resolvable:$true] %s275_s19 }
  0x1f   : > { %s288_s22 = sshll.u32 %s4611_s21, 4  ;;  %s4612_s23 = smov [#allocation13]   ;;  %s4747_s22 = int_to_ptr.vmem [resolvable:$true] %s288_s22 }
  0x20   : > { %s5533_s17 = scalar_select %p4733_p3, 1, 0 }
  0x21   : > { %p4014_p4 = pneg %p4733_p3  ;;  %s4749_s24 = sshll.u32 %s4612_s23, 4  ;;  %s315_s24 = int_to_ptr.vmem [resolvable:$true] %s4749_s24 }
  0x22   : > { %5534 = sst [smem:[#allocation30_spill]] %s5533_s17  ;;  %s5536_s2 = sld [smem:[#allocation37_spill]] }
  0x23   : > { %p4743_p5 = pnand %p4014_p4, %p5504_p1 }
  0x25   : > { %p4759_p7 = pneg %p4743_p5 }
  0x28   : > { %s4238_s18 = scalar_lea.hbm %s5536_s2, 2048 }
  0x29   : > { %p4239_p6 = scmp.ne.s32.totalorder %s5536_s2, %s4238_s18  ;;  %p4245_p10 = scmp.lt.u32.totalorder %s4238_s18, %s5536_s2 }
  0x2b   : > { %p4241_p8 = pnand %p4759_p7, %p4239_p6 }
  0x2d   : > { %p4242_p9 = pneg %p4241_p8 }
  0x2f   : > { %p4247_p11 = pnand %p4245_p10, %p4242_p9 }
  0x31   : > { %4250 = shalt.err (!%p4247_p11)
}
  0x32   : > { %s4251_s7 = scalar_lea.vmem %s4737_s19, 2048  ;;  %p4259_p2 = scmp.lt.s32.totalorder %s4737_s19, %s4737_s19 }
  0x33   : > { %p4252_p12 = scmp.ne.s32.totalorder %s4737_s19, %s4251_s7  ;;  %p4260_p4 = scmp.lt.s32.totalorder %s4251_s7, %s4251_s7 }
  0x35   : > { %p4254_p13 = pnand %p4252_p12, %p4759_p7  ;;  %p4261_p6 = por %p4260_p4, %p4259_p2 }
  0x37   : > { %p4255_p0 = pneg %p4254_p13 }
  0x39   : > { %p4262_p8 = pnand %p4261_p6, %p4255_p0 }
  0x3b   : > { %4265 = shalt.err (!%p4262_p8)
}
  0x3c   : > { %s5506_s8 = smov 64   ;;  %s5508_s25 = smov 4  }
  0x3d   : > { %4017 = dma.hbm_to_vmem [thread:$0]  (!%p4743_p5), %s5536_s2, 2048, %s4737_s19, [#allocation8], %s5506_s8, %s5506_s8, %s5508_s25  }
  0x3e   : > { %s5538_s3 = sld [smem:[#allocation38_spill]] }
  0x44   : > { %s4266_s7 = scalar_lea.hbm %s5538_s3, 2048 }
  0x45   : > { %p4267_p9 = scmp.ne.s32.totalorder %s5538_s3, %s4266_s7  ;;  %p4273_p12 = scmp.lt.u32.totalorder %s4266_s7, %s5538_s3 }
  0x47   : > { %p4269_p10 = pnand %p4267_p9, %p4759_p7 }
  0x49   : > { %p4270_p11 = pneg %p4269_p10 }
  0x4b   : > { %p4275_p13 = pnand %p4273_p12, %p4270_p11 }
  0x4d   : > { %4278 = shalt.err (!%p4275_p13)
}
  0x4e   : > { %s4279_s19 = scalar_lea.vmem %s4747_s22, 2048  ;;  %p4287_p6 = scmp.lt.s32.totalorder %s4747_s22, %s4747_s22 }
  0x4f   : > { %p4280_p0 = scmp.ne.s32.totalorder %s4747_s22, %s4279_s19  ;;  %p4288_p8 = scmp.lt.s32.totalorder %s4279_s19, %s4279_s19 }
  0x51   : > { %p4282_p2 = pnand %p4280_p0, %p4759_p7  ;;  %p4289_p9 = por %p4288_p8, %p4287_p6 }
  0x53   : > { %p4283_p4 = pneg %p4282_p2 }
  0x55   : > { %p4290_p10 = pnand %p4289_p9, %p4283_p4 }
  0x57   : > { %4293 = shalt.err (!%p4290_p10)
}
  0x58   : > { %4020 = dma.hbm_to_vmem [thread:$0]  (!%p4743_p5), %s5538_s3, 2048, %s4747_s22, [#allocation11], %s5506_s8, %s5506_s8, %s5508_s25  }
  0x59   : > { %s5539_s5 = sld [smem:[#allocation40_spill]] }
  0x5f   : > { %s4294_s26 = scalar_lea.hbm %s5539_s5, 256 }
  0x60   : > { %p4295_p11 = scmp.ne.s32.totalorder %s5539_s5, %s4294_s26  ;;  %p4301_p0 = scmp.lt.u32.totalorder %s4294_s26, %s5539_s5 }
  0x62   : > { %p4297_p12 = pnand %p4295_p11, %p4759_p7 }
  0x64   : > { %p4298_p13 = pneg %p4297_p12 }
  0x66   : > { %p4303_p2 = pnand %p4301_p0, %p4298_p13 }
  0x68   : > { %4306 = shalt.err (!%p4303_p2)
}
  0x69   : > { %s4307_s19 = scalar_lea.vmem %s315_s24, 256  ;;  %p4315_p9 = scmp.lt.s32.totalorder %s315_s24, %s315_s24 }
  0x6a   : > { %p4308_p4 = scmp.ne.s32.totalorder %s315_s24, %s4307_s19  ;;  %p4316_p10 = scmp.lt.s32.totalorder %s4307_s19, %s4307_s19 }
  0x6c   : > { %p4310_p6 = pnand %p4308_p4, %p4759_p7  ;;  %p4317_p1 = por %p4316_p10, %p4315_p9 }
  0x6e   : > { %p4311_p8 = pneg %p4310_p6 }
  0x70   : > { %p4318_p3 = pnand %p4317_p1, %p4311_p8 }
  0x72   : > { %4321 = shalt.err (!%p4318_p3)
}
  0x73   : > { %s4615_s22 = smov 32   ;;  %s4616_s0 = smov 2  }
  0x74   : > { %4026 = dma.hbm_to_vmem [thread:$0]  (!%p4743_p5), %s5539_s5, 256, %s315_s24, [#allocation14], %s4615_s22, %s4615_s22, %s4616_s0  }
  0x75   : > { %s4617_s17 = smov [#allocation12]   ;;  %s4618_s18 = smov [#allocation15]  }
  0x76   : > { %s301_s26 = sshll.u32 %s4617_s17, 4  ;;  %s328_s21 = sshll.u32 %s4618_s18, 4  ;;  %s302_s26 = int_to_ptr.vmem [resolvable:$true] %s301_s26  ;;  %s329_s21 = int_to_ptr.vmem [resolvable:$true] %s328_s21 }
  0x77   : > { %s5540_s4 = sld [smem:[#allocation39_spill]] }
  0x7d   : > { %s4322_s19 = scalar_lea.hbm %s5540_s4, 2048 }
  0x7e   : > { %p4323_p1 = scmp.ne.s32.totalorder %s5540_s4, %s4322_s19  ;;  %p4329_p12 = scmp.lt.u32.totalorder %s4322_s19, %s5540_s4 }
  0x80   : > { %p4325_p3 = pnand %p4323_p1, %p4759_p7 }
  0x82   : > { %p4326_p11 = pneg %p4325_p3 }
  0x84   : > { %p4331_p13 = pnand %p4329_p12, %p4326_p11 }
  0x86   : > { %4334 = shalt.err (!%p4331_p13)
}
  0x87   : > { %s4335_s24 = scalar_lea.vmem %s302_s26, 2048  ;;  %p4343_p6 = scmp.lt.s32.totalorder %s302_s26, %s302_s26 }
  0x88   : > { %p4336_p0 = scmp.ne.s32.totalorder %s302_s26, %s4335_s24  ;;  %p4344_p8 = scmp.lt.s32.totalorder %s4335_s24, %s4335_s24 }
  0x8a   : > { %p4338_p2 = pnand %p4336_p0, %p4759_p7  ;;  %p4345_p9 = por %p4344_p8, %p4343_p6 }
  0x8c   : > { %p4339_p4 = pneg %p4338_p2 }
  0x8e   : > { %p4346_p10 = pnand %p4345_p9, %p4339_p4 }
  0x90   : > { %4349 = shalt.err (!%p4346_p10)
}
  0x91   : > { %s5541_s8 = smov 4   ;;  %s5542_s25 = smov 64  }
  0x92   : > { %4023 = dma.hbm_to_vmem [thread:$0]  (!%p4743_p5), %s5540_s4, 2048, %s302_s26, [#allocation11], %s5542_s25, %s5542_s25, %s5541_s8  }
  0x93   : > { %s5543_s6 = sld [smem:[#allocation41_spill]] }
  0x99   : > { %s4350_s1 = scalar_lea.hbm %s5543_s6, 16 }
  0x9a   : > { %p4351_p1 = scmp.ne.s32.totalorder %s5543_s6, %s4350_s1  ;;  %p4357_p12 = scmp.lt.u32.totalorder %s4350_s1, %s5543_s6 }
  0x9c   : > { %p4353_p3 = pnand %p4351_p1, %p4759_p7 }
  0x9e   : > { %p4354_p11 = pneg %p4353_p3 }
  0xa0   : > { %p4359_p13 = pnand %p4357_p12, %p4354_p11 }
  0xa2   : > { %4362 = shalt.err (!%p4359_p13)
}
  0xa3   : > { %s4363_s7 = scalar_lea.vmem %s329_s21, 16  ;;  %s4370_s26 = scalar_lea.vmem %s329_s21, 32 }
  0xa4   : > { %p4364_p0 = scmp.ne.s32.totalorder %s329_s21, %s4363_s7  ;;  %p4371_p6 = scmp.lt.s32.totalorder %s329_s21, %s329_s21 }
  0xa5   : > { %p4372_p8 = scmp.lt.s32.totalorder %s4370_s26, %s4363_s7 }
  0xa6   : > { %p4366_p2 = pnand %p4364_p0, %p4759_p7 }
  0xa7   : > { %p4373_p9 = por %p4372_p8, %p4371_p6 }
  0xa8   : > { %p4367_p4 = pneg %p4366_p2 }
  0xaa   : > { %p4374_p10 = pnand %p4373_p9, %p4367_p4 }
  0xac   : > { %4377 = shalt.err (!%p4374_p10)
}
  0xad   : > { %4029 = dma.hbm_to_vmem [thread:$0]  (!%p4743_p5), %s5543_s6, 16, %s329_s21, [#allocation14]  }
  0xae   : > { %s3400_s12 = sadd.s32 4294967294, %s4608_s15   ;;  %s42_s20 = sadd.s32 1, %s4600_s13 }
  0xaf   : > { %s45_s2 = sadd.s32 1, %s4604_s14  ;;  %p43_p7 = scmp.ge.s32.totalorder %s42_s20, 2 }
  0xb0   : > { %s54_s3 = sadd.s32 1, %s4588_s10  ;;  %p61_p1 = scmp.ne.s32.totalorder %s4588_s10, %s4584_s9 }
  0xb1   : > { %p62_p3 = scmp.eq.s32.totalorder %s4608_s15, 0  ;;  %s5599_s20 = smov (%p43_p7, %s42_s20), 0 }
  0xb2   : > { %5544 = sst [smem:[#allocation31_spill]] %s5599_s20  ;;  %s5601_s2 = smov (!%p43_p7, %s45_s2), %s4604_s14 }
  0xb3   : > { %s50_s21 = ssub.s32 %s4600_s13, %s5599_s20  ;;  %p4882_p5 = por %p62_p3, %p61_p1 }
  0xb4   : > { %p47_p11 = scmp.ge.s32.totalorder %s5601_s2, 2  ;;  %p67_p12 = scmp.ne.s32.totalorder %s4584_s9, %s4580_s30 }
  0xb5   : > { %s80_s0 = sadd.s32 1, %s4576_s29  ;;  %p5510_p13 = scmp.ne.s32.totalorder %s4576_s29, %s4572_s28 }
  0xb6   : > { %s5603_s2 = smov (%p47_p11, %s5601_s2), 0  ;;  %p5547_p0 = scmp.eq.s32.totalorder %s4728_s16, 0 }
  0xb7   : > { %5546 = sst [smem:[#allocation32_spill]] %s5603_s2  ;;  %p4905_p4 = por %p5510_p13, %p62_p3 }
  0xb8   : > { %p4898_p2 = por %p5547_p0, %p67_p12  ;;  %s49_s17 = ssub.s32 %s4604_s14, %s5603_s2 }
  0xb9   : > { %p93_p6 = scmp.ne.s32.totalorder %s4572_s28, %s4568_s27  ;;  %s51_s18 = sor.u32 %s50_s21, %s49_s17 }
  0xba   : > { %s5548_s1 = scalar_select %p4898_p2, 1, 0 }
  0xbb   : > { %p78_p8 = scmp.eq.s32.totalorder %s49_s17, 0  ;;  %p52_p9 = scmp.eq.s32.totalorder %s51_s18, 0 }
  0xbc   : > { %p5550_p10 = pmov %p5547_p0  ;;  %p224_p3 = scmp.eq.s32.totalorder %s4728_s16, 3 }
  0xbd   : > { %s4923_s7 = scalar_select %p78_p8, %s4576_s29, %s80_s0  }
  0xbe   : > { %p4918_p7 = por %p93_p6, %p5550_p10  ;;  %p230_p11 = scmp.eq.s32.totalorder %s3400_s12, 3 }
  0xbf   : > { %5552 = sst [smem:[#allocation33_spill]] %s4923_s7  ;;  %p4049_p0 = scmp.lt.s32.totalorder %s4608_s15, 4 }
  0xc0   : > { %s5551_s23 = scalar_select %p4918_p7, 1, 0 }
  0xc1   : > { %s4926_s26 = scalar_select %p52_p9, %s4588_s10, %s54_s3  }
  0xc2   : > { %s339_s19 = sand.u32 1, %s4588_s10   ;;  %p4934_p13 = por %p224_p3, %p61_p1 }
  0xc3   : > { %5553 = sst [smem:[#allocation34_spill]] %s4926_s26  ;;  %p4941_p10 = por %p230_p11, %p67_p12 }
  0xc4   : > { %s5554_s24 = scalar_select %p4934_p13, 1, 0 }
  0xc5   : > { %s5555_s21 = scalar_select %p4941_p10, 1, 0 }
  0xc6   : > { %p5556_p8 = scmp.ne.s32.totalorder %s4576_s29, %s4572_s28  ;;  %p4955_p7 = por %p230_p11, %p93_p6 }
  0xc7   : > { %s3408_s0 = sshll.u32 %s339_s19, 2  ;;  %s3409_s17 = sshll.u32 %s4604_s14, 1 }
  0xc8   : > { %p4948_p9 = por %p224_p3, %p5556_p8  ;;  %s348_s18 = sadd.s32 %s4600_s13, %s3409_s17 }
  0xc9   : > { %s5558_s12 = scalar_select %p4955_p7, 1, 0 }
  0xca   : > { %s5557_s3 = scalar_select %p4948_p9, 1, 0 }
  0xcb   : > { %s343_s4 = scalar_lea.vmem [#allocation4], %s3408_s0  ;;  %s3410_s6 = sshll.u32 %s348_s18, 6 }
  0xcc   : > { %s352_s5 = sshll.u32 %s343_s4, 4  ;;  %s5559_s26 = sld [smem:[#allocation35_spill]]  ;;  %s4961_s5 = int_to_ptr.vmem [resolvable:$true] %s352_s5 }
  0xcd   : > { %p4972_p1 = pnand %p4049_p0, %p4882_p5  ;;  %p4980_p12 = pnand %p4049_p0, %p4905_p4 }
  0xce   : > { %s340_s20 = scalar_lea.sflag [#allocation5], %s339_s19 }
  0xcf   : > { %p4380_p3 = pneg %p4972_p1 }
  0xd2   : > { %s4966_s10 = scalar_lea.hbm %s5559_s26, %s3410_s6  ;;  %s4383_s11 = scalar_lea.hbm %s5559_s26, 256 }
  0xd3   : > { %s4378_s2 = scalar_lea.hbm %s4966_s10, 64  ;;  %p4384_p4 = scmp.lt.u32.totalorder %s4966_s10, %s5559_s26 }
  0xd4   : > { %p4379_p6 = scmp.ne.s32.totalorder %s4966_s10, %s4378_s2  ;;  %p4385_p0 = scmp.lt.u32.totalorder %s4383_s11, %s4378_s2 }
  0xd5   : > { %p4387_p7 = scmp.lt.u32.totalorder %s4378_s2, %s4966_s10 }
  0xd6   : > { %p4381_p5 = pnand %p4380_p3, %p4379_p6  ;;  %p4386_p8 = por %p4385_p0, %p4384_p4 }
  0xd8   : > { %p4382_p11 = pneg %p4381_p5  ;;  %p4388_p10 = por %p4387_p7, %p4386_p8 }
  0xda   : > { %p4389_p9 = pnand %p4388_p10, %p4382_p11 }
  0xdc   : > { %4392 = shalt.err (!%p4389_p9)
}
  0xdd   : > { %s4393_s19 = scalar_lea.vmem %s4961_s5, 64  ;;  %s4619_s22 = smov [#allocation4]  }
  0xde   : > { %p4394_p6 = scmp.ne.s32.totalorder %s4961_s5, %s4393_s19  ;;  %s4398_s0 = sshll.u32 %s4619_s22, 4  ;;  %s4399_s0 = int_to_ptr.vmem [resolvable:$false] %s4398_s0 }
  0xdf   : > { %s4400_s17 = scalar_lea.vmem %s4399_s0, 128  ;;  %p4401_p2 = scmp.lt.s32.totalorder %s4961_s5, %s4399_s0 }
  0xe0   : > { %p4396_p5 = pnand %p4394_p6, %p4380_p3  ;;  %p4402_p4 = scmp.lt.s32.totalorder %s4400_s17, %s4393_s19 }
  0xe2   : > { %p4397_p13 = pneg %p4396_p5  ;;  %p4403_p0 = por %p4402_p4, %p4401_p2 }
  0xe4   : > { %p4404_p7 = pnand %p4403_p0, %p4397_p13 }
  0xe6   : > { %4407 = shalt.err (!%p4404_p7)
}
  0xe7   : > { %4033 = dma.hbm_to_vmem [thread:$0]  (!%p4972_p1), %s4966_s10, 64, %s4961_s5, %s340_s20  }
  0xe8   : > { %s361_s2 = sand.u32 1, %s4576_s29   ;;  %s3529_s18 = sshll.u32 %s4604_s14, 7 }
  0xe9   : > { %s3411_s11 = sshll.u32 %s361_s2, 3  ;;  %s5562_s0 = sld [smem:[#allocation36_spill]] }
  0xea   : > { %s363_s7 = scalar_lea.vmem [#allocation7], %s3411_s11  ;;  %s5563_s26 = sand.u32 1, %s4608_s15  }
  0xeb   : > { %s370_s17 = sshll.u32 %s363_s7, 4  ;;  %s5021_s13 = scalar_lea.sflag [#allocation8], %s5563_s26  ;;  %s5017_s17 = int_to_ptr.vmem [resolvable:$true] %s370_s17 }
  0xec   : > { %p4410_p2 = pneg %p4980_p12 }
  0xef   : > { %s5015_s19 = scalar_lea.hbm %s5562_s0, %s3529_s18  ;;  %s4413_s20 = scalar_lea.hbm %s5562_s0, 256 }
  0xf0   : > { %s4408_s5 = scalar_lea.hbm %s5015_s19, 128  ;;  %p4414_p1 = scmp.lt.u32.totalorder %s5015_s19, %s5562_s0 }
  0xf1   : > { %p4409_p13 = scmp.ne.s32.totalorder %s5015_s19, %s4408_s5  ;;  %p4415_p3 = scmp.lt.u32.totalorder %s4413_s20, %s4408_s5 }
  0xf2   : > { %p4417_p8 = scmp.lt.u32.totalorder %s4408_s5, %s5015_s19 }
  0xf3   : > { %p4411_p10 = pnand %p4410_p2, %p4409_p13  ;;  %p4416_p11 = por %p4415_p3, %p4414_p1 }
  0xf5   : > { %p4412_p9 = pneg %p4411_p10  ;;  %p4418_p6 = por %p4417_p8, %p4416_p11 }
  0xf7   : > { %p4419_p5 = pnand %p4418_p6, %p4412_p9 }
  0xf9   : > { %4422 = shalt.err (!%p4419_p5)
}
  0xfa   : > { %s4423_s26 = scalar_lea.vmem %s5017_s17, 128  ;;  %s4620_s18 = smov [#allocation7]  }
  0xfb   : > { %p4424_p4 = scmp.ne.s32.totalorder %s5017_s17, %s4423_s26  ;;  %s4428_s22 = sshll.u32 %s4620_s18, 4  ;;  %s4429_s22 = int_to_ptr.vmem [resolvable:$false] %s4428_s22 }
  0xfc   : > { %s4430_s7 = scalar_lea.vmem %s4429_s22, 256  ;;  %p4431_p13 = scmp.lt.s32.totalorder %s5017_s17, %s4429_s22 }
  0xfd   : > { %p4426_p0 = pnand %p4424_p4, %p4410_p2  ;;  %p4432_p10 = scmp.lt.s32.totalorder %s4430_s7, %s4423_s26 }
  0xff   : > { %p4427_p7 = pneg %p4426_p0  ;;  %p4433_p1 = por %p4432_p10, %p4431_p13 }
 0x101   : > { %p4434_p3 = pnand %p4433_p1, %p4427_p7 }
 0x103   : > { %4437 = shalt.err (!%p4434_p3)
}
 0x104   : > { %4036 = dma.hbm_to_vmem [thread:$0]  (!%p4980_p12), %s5015_s19, 128, %s5017_s17, %s5021_s13, %s5542_s25, %s5542_s25, %s5541_s8  }
 0x105   : > { %s5564_s5 = sld [smem:[#allocation30_spill]] }
 0x10b   : > { %p5565_p2 = scmp.ne.s32.totalorder %s5564_s5, 0 }
 0x10c   : > { %s5055_s10 = sand.u32 (!%p5565_p2), 1, %s4584_s9   ;;  %p5566_p9 = scmp.ne.s32.totalorder (!%p5565_p2), %s5548_s1, 0 }
 0x10d   : > { %382 = sbr.rel (%p5565_p2) target bundleno = 7095 (0x1bb7), region = 48  ;;  %s3415_s6 = sshll.u32 (!%p5565_p2), %s5055_s10, 2 }
 0x10e   : > { %s385_s20 = scalar_lea.sflag (!%p5565_p2), [#allocation5], %s5055_s10  ;;  %s5059_s2 = scalar_lea.vmem (!%p5565_p2), [#allocation4], %s3415_s6 }
 0x114   : > { %4539 = dma.done.wait (%p5566_p9), %s385_s20, 64  }
 0x115   : > { %4541 = vsyncadd (%p5566_p9), %s385_s20, 4294967232  ;;  %s393_s13 = sand.u32 1, %s4728_s16   ;;  %s5067_s8 = sand.u32 1, %s4572_s28  }
 0x116   : > { %s3416_s25 = sshll.u32 %s5067_s8, 3  ;;  %s394_s4 = scalar_lea.sflag [#allocation8], %s393_s13 }
 0x117   : > { %s397_s19 = scalar_lea.vmem [#allocation7], %s3416_s25  ;;  %p5567_p12 = scmp.ne.s32.totalorder %s5551_s23, 0 }
 0x119   : > { %4543 = dma.done.wait (%p5567_p12), %s394_s4, 128  }
 0x11a   : > { %4545 = vsyncadd (%p5567_p12), %s394_s4, 4294967168  ;;  %p5568_p11 = scmp.eq.s32.totalorder %s4728_s16, 0 }
 0x11c   : > { %4547 = dma.done.wait (%p5568_p11), [#allocation8], 2048   ;;  %p5569_p8 = pmov %p5568_p11 }
 0x11e   : > { %4549 = vsyncadd (%p5569_p8), [#allocation8], 4294965248  ;;  %p5570_p6 = pmov %p5569_p8 }
 0x120   : > { %4551 = dma.done.wait (%p5570_p6), [#allocation11], 4096   ;;  %p5571_p5 = pmov %p5570_p6 }
 0x122   : > { %4553 = vsyncadd (%p5571_p5), [#allocation11], 4294963200  ;;  %p5572_p4 = pmov %p5571_p5 }
 0x124   : > { %4555 = dma.done.wait (%p5572_p4), [#allocation14], 272   ;;  %p5573_p0 = pmov %p5572_p4 }
 0x125   : > { %s3422_s1 = sshll.u32 %s5055_s10, 3  ;;  %s5090_s17 = scalar_lea.vmem [#allocation17], %s5067_s8 }
 0x126   : > { %4557 = vsyncadd (%p5573_p0), [#allocation14], 4294967024  ;;  %s5087_s23 = scalar_lea.vmem [#allocation16], %s3422_s1  ;;  %s5574_s11 = sld [smem:[#allocation27_spill]] }
 0x12c   : > { %p3423_p7 = scmp.ne.s32.totalorder %s5574_s11, 0 }
 0x12d   : > { %v4157_v0 = vld [vmem:[#allocation10] sm:$0xff] (!%p3423_p7)   ;;  %v4621_v1 = vmov (!%p3423_p7), 0.0   ;;  %v4159_v3 = vld [vmem:[#allocation10 + $0x8] sm:$0xff] (!%p3423_p7)   ;;  %vm4622_vm0 = vmmov (!%p3423_p7), 0   ;;  %v5101_v5 = vld [vmem:[%s397_s19] sm:$0xff] (!%p3423_p7)   ;;  %vm487_vm1 = vcmask (!%p3423_p7), 261120  }
 0x12e   : > { %463 = sbr.rel (%p3423_p7) target bundleno = 584 (0x248), region = 80  ;;  %3650 = vmatprep.subr.bf16.mxu0 (!%p3423_p7), %v4621_v1  ;;  %3658 = vmatprep.subr.bf16.mxu1 (!%p3423_p7), %v4621_v1  ;;  %v4158_v2 = vld [vmem:[#allocation12] sm:$0xff] (!%p3423_p7)   ;;  %v4160_v4 = vld [vmem:[#allocation12 + $0x8] sm:$0xff] (!%p3423_p7)   ;;  %v4162_v6 = vld [vmem:[#allocation10 + $0x10] sm:$0xff] (!%p3423_p7)   ;;  %vm1448_vm2 = vcmask (!%p3423_p7), 253952   ;;  %vm533_vm3 = vcmask (!%p3423_p7), 31744  }
 0x12f   : > { %3651 = vmatpush3.bf16.msra.mxu0 (!%p3423_p7), %v4157_v0  ;;  %3654 = vmatprep.mubr.msk.bf16.mxu0 (!%p3423_p7), %vm4622_vm0, %v4621_v1  ;;  %v4163_v7 = vld [vmem:[#allocation12 + $0x10] sm:$0xff] (!%p3423_p7)   ;;  %v4164_v8 = vld [vmem:[#allocation10 + $0x18] sm:$0xff] (!%p3423_p7)   ;;  %v4166_v10 = vld [vmem:[#allocation10 + $0x20] sm:$0xff] (!%p3423_p7)   ;;  %1449 = vst.msk [vmem:[%s5090_s17] sm:$0x1] (!%p3423_p7), %vm1448_vm2, %v4621_v1 }
 0x130   : > { %3659 = vmatpush3.bf16.msra.mxu1 (!%p3423_p7), %v4158_v2  ;;  %3652 = vmatprep.subr.bf16.mxu0 (!%p3423_p7), %v4621_v1  ;;  %v4165_v9 = vld [vmem:[#allocation12 + $0x18] sm:$0xff] (!%p3423_p7)   ;;  %v4167_v11 = vld [vmem:[#allocation12 + $0x20] sm:$0xff] (!%p3423_p7)   ;;  %v4168_v12 = vld [vmem:[#allocation10 + $0x28] sm:$0xff] (!%p3423_p7)  }
 0x131   : > { %3660 = vmatprep.subr.bf16.mxu1 (!%p3423_p7), %v4621_v1  ;;  %3662 = vmatprep.mubr.msk.bf16.mxu1 (!%p3423_p7), %vm4622_vm0, %v4621_v1  ;;  %v4169_v13 = vld [vmem:[#allocation12 + $0x28] sm:$0xff] (!%p3423_p7)   ;;  %v4170_v14 = vld [vmem:[#allocation10 + $0x30] sm:$0xff] (!%p3423_p7)   ;;  %v4172_v16 = vld [vmem:[#allocation10 + $0x38] sm:$0xff] (!%p3423_p7)  }
 0x132   : > { %v4171_v15 = vld [vmem:[#allocation12 + $0x30] sm:$0xff] (!%p3423_p7)   ;;  %v4173_v17 = vld [vmem:[#allocation12 + $0x38] sm:$0xff] (!%p3423_p7)   ;;  %v4174_v18 = vld [vmem:[#allocation10 + $0x40] sm:$0xff] (!%p3423_p7)  }
 0x133   : > { %3653 = vmatpush3.bf16.msra.mxu0 (!%p3423_p7), %v4159_v3  ;;  %v4175_v19 = vld [vmem:[#allocation12 + $0x40] sm:$0xff] (!%p3423_p7)   ;;  %v4176_v20 = vld [vmem:[#allocation10 + $0x48] sm:$0xff] (!%p3423_p7)   ;;  %v4178_v22 = vld [vmem:[#allocation10 + $0x50] sm:$0xff] (!%p3423_p7)  }
 0x134   : > { %3661 = vmatpush3.bf16.msra.mxu1 (!%p3423_p7), %v4160_v4  ;;  %3666 = vmatprep.subr.bf16.mxu0 (!%p3423_p7), %v4621_v1  ;;  %v4177_v21 = vld [vmem:[#allocation12 + $0x48] sm:$0xff] (!%p3423_p7)   ;;  %v4179_v23 = vld [vmem:[#allocation12 + $0x50] sm:$0xff] (!%p3423_p7)   ;;  %v4180_v24 = vld [vmem:[#allocation10 + $0x58] sm:$0xff] (!%p3423_p7)  }
 0x135   : > { %3674 = vmatprep.subr.bf16.mxu1 %v4621_v1  ;;  %v4181_v25 = vld [vmem:[#allocation12 + $0x58] sm:$0xff]   ;;  %v4182_v26 = vld [vmem:[#allocation10 + $0x60] sm:$0xff]   ;;  %v4184_v28 = vld [vmem:[#allocation10 + $0x68] sm:$0xff]  }
 0x136   : > { %3655 = vmatmul.mubr.msk.bf16.vlgmr.msra.gmra.mrb[0].mxu0 %vm487_vm1, %v5101_v5  ;;  %v4183_v27 = vld [vmem:[#allocation12 + $0x60] sm:$0xff]   ;;  %v4185_v29 = vld [vmem:[#allocation12 + $0x68] sm:$0xff]   ;;  %v4186_v30 = vld [vmem:[#allocation10 + $0x70] sm:$0xff]  }
 0x137   : > { %3663 = vmatmul.mubr.msk.bf16.vlgmr.msra.gmra.mrb[0].mxu1 %vm487_vm1, %v5101_v5  ;;  %3667 = vmatpush3.bf16.msra.mxu0 %v4162_v6  ;;  %v4187_v31 = vld [vmem:[#allocation12 + $0x70] sm:$0xff]   ;;  %v4188_v32 = vld [vmem:[#allocation10 + $0x78] sm:$0xff]  }
 0x138   : > { %3675 = vmatpush3.bf16.msra.mxu1 %v4163_v7  ;;  %3668 = vmatprep.subr.bf16.mxu0 %v4621_v1  ;;  %v4189_v33 = vld [vmem:[#allocation12 + $0x78] sm:$0xff]  }
 0x139   : > { %3676 = vmatprep.subr.bf16.mxu1 %v4621_v1  ;;  %3670 = vmatprep.mubr.msk.bf16.mxu0 %vm4622_vm0, %v4621_v1 }
 0x13a   : > { %3678 = vmatprep.mubr.msk.bf16.mxu1 %vm4622_vm0, %v4621_v1 }
 0x13b   : > { %3669 = vmatpush3.bf16.msra.mxu0 %v4164_v8 }
 0x13c   : > { %3677 = vmatpush3.bf16.msra.mxu1 %v4165_v9  ;;  %3682 = vmatprep.subr.bf16.mxu0 %v4621_v1 }
 0x13d   : > { %3690 = vmatprep.subr.bf16.mxu1 %v4621_v1 }
 0x13e   : > { %3671 = vmatmul.mubr.msk.bf16.vlgmr.msra.gmra.mrb[4].mxu0 %vm487_vm1, %v5101_v5 }
 0x13f   : > { %3679 = vmatmul.mubr.msk.bf16.vlgmr.msra.gmra.mrb[4].mxu1 %vm487_vm1, %v5101_v5  ;;  %3683 = vmatpush3.bf16.msra.mxu0 %v4166_v10 }
 0x140   : > { %3691 = vmatpush3.bf16.msra.mxu1 %v4167_v11  ;;  %3684 = vmatprep.subr.bf16.mxu0 %v4621_v1 }
 0x141   : > { %3692 = vmatprep.subr.bf16.mxu1 %v4621_v1  ;;  %3686 = vmatprep.mubr.msk.bf16.mxu0 %vm4622_vm0, %v4621_v1 }
 0x142   : > { %3694 = vmatprep.mubr.msk.bf16.mxu1 %vm4622_vm0, %v4621_v1 }
 0x143   : > { %3685 = vmatpush3.bf16.msra.mxu0 %v4168_v12 }
 0x144   : > { %3693 = vmatpush3.bf16.msra.mxu1 %v4169_v13  ;;  %3698 = vmatprep.subr.bf16.mxu0 %v4621_v1 }
 0x145   : > { %3706 = vmatprep.subr.bf16.mxu1 %v4621_v1 }
 0x146   : > { %3687 = vmatmul.mubr.msk.bf16.vlgmr.msra.gmra.mrb[8].mxu0 %vm487_vm1, %v5101_v5 }
 0x147   : > { %3695 = vmatmul.mubr.msk.bf16.vlgmr.msra.gmra.mrb[8].mxu1 %vm487_vm1, %v5101_v5  ;;  %3699 = vmatpush3.bf16.msra.mxu0 %v4170_v14 }
 0x148   : > { %3707 = vmatpush3.bf16.msra.mxu1 %v4171_v15  ;;  %3700 = vmatprep.subr.bf16.mxu0 %v4621_v1 }
 0x149   : > { %3708 = vmatprep.subr.bf16.mxu1 %v4621_v1  ;;  %3702 = vmatprep.mubr.msk.bf16.mxu0 %vm4622_vm0, %v4621_v1 }
 0x14a   : > { %3710 = vmatprep.mubr.msk.bf16.mxu1 %vm4622_vm0, %v4621_v1 }
 0x14b   : > { %3701 = vmatpush3.bf16.msra.mxu0 %v4172_v16 }
 0x14c   : > { %3709 = vmatpush3.bf16.msra.mxu1 %v4173_v17  ;;  %3714 = vmatprep.subr.bf16.mxu0 %v4621_v1 }
 0x14d   : > { %3722 = vmatprep.subr.bf16.mxu1 %v4621_v1 }
 0x14e   : > { %3703 = vmatmul.mubr.msk.bf16.vlgmr.msra.gmra.mrb[12].mxu0 %vm487_vm1, %v5101_v5 }
 0x14f   : > { %3711 = vmatmul.mubr.msk.bf16.vlgmr.msra.gmra.mrb[12].mxu1 %vm487_vm1, %v5101_v5  ;;  %3715 = vmatpush3.bf16.msra.mxu0 %v4174_v18 }
 0x150   : > { %3723 = vmatpush3.bf16.msra.mxu1 %v4175_v19  ;;  %3716 = vmatprep.subr.bf16.mxu0 %v4621_v1 }
 0x151   : > { %3724 = vmatprep.subr.bf16.mxu1 %v4621_v1  ;;  %3718 = vmatprep.mubr.msk.bf16.mxu0 %vm4622_vm0, %v4621_v1 }
 0x152   : > { %3726 = vmatprep.mubr.msk.bf16.mxu1 %vm4622_vm0, %v4621_v1 }
 0x153   : > { %3717 = vmatpush3.bf16.msra.mxu0 %v4176_v20 }
 0x154   : > { %3725 = vmatpush3.bf16.msra.mxu1 %v4177_v21  ;;  %3730 = vmatprep.subr.bf16.mxu0 %v4621_v1 }
 0x155   : > { %3738 = vmatprep.subr.bf16.mxu1 %v4621_v1 }
 0x156   : > { %3719 = vmatmul.mubr.msk.bf16.vlgmr.msra.gmra.mrb[16].mxu0 %vm487_vm1, %v5101_v5 }
 0x157   : > { %3727 = vmatmul.mubr.msk.bf16.vlgmr.msra.gmra.mrb[16].mxu1 %vm487_vm1, %v5101_v5  ;;  %3731 = vmatpush3.bf16.msra.mxu0 %v4178_v22 }
 0x158   : > { %3739 = vmatpush3.bf16.msra.mxu1 %v4179_v23  ;;  %3732 = vmatprep.subr.bf16.mxu0 %v4621_v1 }
 0x159   : > { %3740 = vmatprep.subr.bf16.mxu1 %v4621_v1  ;;  %3734 = vmatprep.mubr.msk.bf16.mxu0 %vm4622_vm0, %v4621_v1 }
 0x15a   : > { %3742 = vmatprep.mubr.msk.bf16.mxu1 %vm4622_vm0, %v4621_v1 }
 0x15b   : > { %3733 = vmatpush3.bf16.msra.mxu0 %v4180_v24 }
 0x15c   : > { %3741 = vmatpush3.bf16.msra.mxu1 %v4181_v25  ;;  %3746 = vmatprep.subr.bf16.mxu0 %v4621_v1 }
 0x15d   : > { %3754 = vmatprep.subr.bf16.mxu1 %v4621_v1 }
 0x15e   : > { %3735 = vmatmul.mubr.msk.bf16.vlgmr.msra.gmra.mrb[20].mxu0 %vm487_vm1, %v5101_v5 }
 0x15f   : > { %3743 = vmatmul.mubr.msk.bf16.vlgmr.msra.gmra.mrb[20].mxu1 %vm487_vm1, %v5101_v5  ;;  %3747 = vmatpush3.bf16.msra.mxu0 %v4182_v26 }
 0x160   : > { %3755 = vmatpush3.bf16.msra.mxu1 %v4183_v27  ;;  %3748 = vmatprep.subr.bf16.mxu0 %v4621_v1 }
 0x161   : > { %3756 = vmatprep.subr.bf16.mxu1 %v4621_v1  ;;  %3750 = vmatprep.mubr.msk.bf16.mxu0 %vm4622_vm0, %v4621_v1 }
 0x162   : > { %3758 = vmatprep.mubr.msk.bf16.mxu1 %vm4622_vm0, %v4621_v1 }
 0x163   : > { %3749 = vmatpush3.bf16.msra.mxu0 %v4184_v28 }
 0x164   : > { %3757 = vmatpush3.bf16.msra.mxu1 %v4185_v29  ;;  %3762 = vmatprep.subr.bf16.mxu0 %v4621_v1 }
 0x165   : > { %3770 = vmatprep.subr.bf16.mxu1 %v4621_v1 }
 0x166   : > { %3751 = vmatmul.mubr.msk.bf16.vlgmr.msra.gmra.mrb[24].mxu0 %vm487_vm1, %v5101_v5 }
 0x167   : > { %3759 = vmatmul.mubr.msk.bf16.vlgmr.msra.gmra.mrb[24].mxu1 %vm487_vm1, %v5101_v5  ;;  %3763 = vmatpush3.bf16.msra.mxu0 %v4186_v30 }
 0x168   : > { %3771 = vmatpush3.bf16.msra.mxu1 %v4187_v31  ;;  %3764 = vmatprep.subr.bf16.mxu0 %v4621_v1 }
 0x169   : > { %3772 = vmatprep.subr.bf16.mxu1 %v4621_v1  ;;  %3766 = vmatprep.mubr.msk.bf16.mxu0 %vm4622_vm0, %v4621_v1 }
 0x16a   : > { %3774 = vmatprep.mubr.msk.bf16.mxu1 %vm4622_vm0, %v4621_v1 }
 0x16b   : > { %3765 = vmatpush3.bf16.msra.mxu0 %v4188_v32 }
 0x16c   : > { %3773 = vmatpush3.bf16.msra.mxu1 %v4189_v33 }
 0x16e   : > { %3767 = vmatmul.mubr.msk.bf16.vlgmr.msra.gmra.mrb[28].mxu0 %vm487_vm1, %v5101_v5 }
 0x16f   : > { %3775 = vmatmul.mubr.msk.bf16.vlgmr.msra.gmra.mrb[28].mxu1 %vm487_vm1, %v5101_v5 }
 0x209   : > { %v525_v34 = vpop.f32.mrb[0].mxu0 }
 0x20a   : > { %v585_v35 = vpop.f32.mrb[0].mxu1  ;;  %v3656_v36 = vpop.f32.mrb[1].mxu0 }
 0x20b   : > { %v3664_v37 = vpop.f32.mrb[1].mxu1  ;;  %v528_v38 = vpop.f32.mrb[2].mxu0 }
 0x20c   : > { %v532_v39 = vpack.c.bf16 %v528_v38, %v525_v34  ;;  %v588_v40 = vpop.f32.mrb[2].mxu1  ;;  %v3657_v41 = vpop.f32.mrb[3].mxu0 }
 0x20d   : > { %v592_v42 = vpack.c.bf16 %v588_v40, %v585_v35  ;;  %v3665_v43 = vpop.f32.mrb[3].mxu1 }
 0x20e   : > { %534 = vst.msk [vmem:[#allocation2] sm:$0xff] %vm533_vm3, %v532_v39 }
 0x20f   : > { %593 = vst.msk [vmem:[#allocation3] sm:$0xff] %vm533_vm3, %v592_v42 }
 0x211   : > { %v645_v44 = vpop.f32.mrb[4].mxu0 }
 0x212   : > { %v706_v45 = vpop.f32.mrb[4].mxu1  ;;  %v3672_v46 = vpop.f32.mrb[5].mxu0 }
 0x213   : > { %v3680_v47 = vpop.f32.mrb[5].mxu1  ;;  %v648_v48 = vpop.f32.mrb[6].mxu0 }
 0x214   : > { %v652_v49 = vpack.c.bf16 %v648_v48, %v645_v44  ;;  %v709_v50 = vpop.f32.mrb[6].mxu1  ;;  %v3673_v51 = vpop.f32.mrb[7].mxu0 }
 0x215   : > { %v713_v52 = vpack.c.bf16 %v709_v50, %v706_v45  ;;  %v3681_v53 = vpop.f32.mrb[7].mxu1 }
 0x216   : > { %654 = vst.msk [vmem:[#allocation2 + $0x8] sm:$0xff] %vm533_vm3, %v652_v49 }
 0x217   : > { %715 = vst.msk [vmem:[#allocation3 + $0x8] sm:$0xff] %vm533_vm3, %v713_v52 }
 0x219   : > { %v767_v54 = vpop.f32.mrb[8].mxu0 }
 0x21a   : > { %v828_v55 = vpop.f32.mrb[8].mxu1  ;;  %v3688_v56 = vpop.f32.mrb[9].mxu0 }
 0x21b   : > { %v3696_v57 = vpop.f32.mrb[9].mxu1  ;;  %v770_v58 = vpop.f32.mrb[10].mxu0 }
 0x21c   : > { %v774_v59 = vpack.c.bf16 %v770_v58, %v767_v54  ;;  %v831_v60 = vpop.f32.mrb[10].mxu1  ;;  %v3689_v61 = vpop.f32.mrb[11].mxu0 }
 0x21d   : > { %v835_v62 = vpack.c.bf16 %v831_v60, %v828_v55  ;;  %v3697_v63 = vpop.f32.mrb[11].mxu1 }
 0x21e   : > { %776 = vst.msk [vmem:[#allocation2 + $0x10] sm:$0xff] %vm533_vm3, %v774_v59 }
 0x21f   : > { %837 = vst.msk [vmem:[#allocation3 + $0x10] sm:$0xff] %vm533_vm3, %v835_v62 }
 0x221   : > { %v889_v0 = vpop.f32.mrb[12].mxu0 }
 0x222   : > { %v950_v1 = vpop.f32.mrb[12].mxu1  ;;  %v3704_v2 = vpop.f32.mrb[13].mxu0 }
 0x223   : > { %v3712_v3 = vpop.f32.mrb[13].mxu1  ;;  %v892_v4 = vpop.f32.mrb[14].mxu0 }
 0x224   : > { %v896_v5 = vpack.c.bf16 %v892_v4, %v889_v0  ;;  %v953_v6 = vpop.f32.mrb[14].mxu1  ;;  %v3705_v7 = vpop.f32.mrb[15].mxu0 }
 0x225   : > { %v957_v8 = vpack.c.bf16 %v953_v6, %v950_v1  ;;  %v3713_v9 = vpop.f32.mrb[15].mxu1 }
 0x226   : > { %898 = vst.msk [vmem:[#allocation2 + $0x18] sm:$0xff] %vm533_vm3, %v896_v5 }
 0x227   : > { %959 = vst.msk [vmem:[#allocation3 + $0x18] sm:$0xff] %vm533_vm3, %v957_v8 }
 0x229   : > { %v1011_v10 = vpop.f32.mrb[16].mxu0 }
 0x22a   : > { %v1072_v11 = vpop.f32.mrb[16].mxu1  ;;  %v3720_v12 = vpop.f32.mrb[17].mxu0 }
 0x22b   : > { %v3728_v13 = vpop.f32.mrb[17].mxu1  ;;  %v1014_v14 = vpop.f32.mrb[18].mxu0 }
 0x22c   : > { %v1018_v15 = vpack.c.bf16 %v1014_v14, %v1011_v10  ;;  %v1075_v16 = vpop.f32.mrb[18].mxu1  ;;  %v3721_v17 = vpop.f32.mrb[19].mxu0 }
 0x22d   : > { %v1079_v18 = vpack.c.bf16 %v1075_v16, %v1072_v11  ;;  %v3729_v19 = vpop.f32.mrb[19].mxu1 }
 0x22e   : > { %1020 = vst.msk [vmem:[#allocation2 + $0x20] sm:$0xff] %vm533_vm3, %v1018_v15 }
 0x22f   : > { %1081 = vst.msk [vmem:[#allocation3 + $0x20] sm:$0xff] %vm533_vm3, %v1079_v18 }
 0x231   : > { %v1133_v20 = vpop.f32.mrb[20].mxu0 }
 0x232   : > { %v1194_v21 = vpop.f32.mrb[20].mxu1  ;;  %v3736_v22 = vpop.f32.mrb[21].mxu0 }
 0x233   : > { %v3744_v23 = vpop.f32.mrb[21].mxu1  ;;  %v1136_v24 = vpop.f32.mrb[22].mxu0 }
 0x234   : > { %v1140_v25 = vpack.c.bf16 %v1136_v24, %v1133_v20  ;;  %v1197_v26 = vpop.f32.mrb[22].mxu1  ;;  %v3737_v27 = vpop.f32.mrb[23].mxu0 }
 0x235   : > { %v1201_v28 = vpack.c.bf16 %v1197_v26, %v1194_v21  ;;  %v3745_v29 = vpop.f32.mrb[23].mxu1 }
 0x236   : > { %1142 = vst.msk [vmem:[#allocation2 + $0x28] sm:$0xff] %vm533_vm3, %v1140_v25 }
 0x237   : > { %1203 = vst.msk [vmem:[#allocation3 + $0x28] sm:$0xff] %vm533_vm3, %v1201_v28 }
 0x239   : > { %v1255_v30 = vpop.f32.mrb[24].mxu0 }
 0x23a   : > { %v1316_v31 = vpop.f32.mrb[24].mxu1  ;;  %v3752_v32 = vpop.f32.mrb[25].mxu0 }
 0x23b   : > { %v3760_v33 = vpop.f32.mrb[25].mxu1  ;;  %v1258_v34 = vpop.f32.mrb[26].mxu0 }
 0x23c   : > { %v1262_v35 = vpack.c.bf16 %v1258_v34, %v1255_v30  ;;  %v1319_v36 = vpop.f32.mrb[26].mxu1  ;;  %v3753_v37 = vpop.f32.mrb[27].mxu0 }
 0x23d   : > { %v1323_v38 = vpack.c.bf16 %v1319_v36, %v1316_v31  ;;  %v3761_v39 = vpop.f32.mrb[27].mxu1 }
 0x23e   : > { %1264 = vst.msk [vmem:[#allocation2 + $0x30] sm:$0xff] %vm533_vm3, %v1262_v35 }
 0x23f   : > { %1325 = vst.msk [vmem:[#allocation3 + $0x30] sm:$0xff] %vm533_vm3, %v1323_v38 }
 0x241   : > { %v1377_v40 = vpop.f32.mrb[28].mxu0 }
 0x242   : > { %v1438_v41 = vpop.f32.mrb[28].mxu1  ;;  %v3768_v42 = vpop.f32.mrb[29].mxu0 }
 0x243   : > { %v3776_v43 = vpop.f32.mrb[29].mxu1  ;;  %v1380_v44 = vpop.f32.mrb[30].mxu0 }
 0x244   : > { %v1384_v45 = vpack.c.bf16 %v1380_v44, %v1377_v40  ;;  %v1441_v46 = vpop.f32.mrb[30].mxu1  ;;  %v3769_v47 = vpop.f32.mrb[31].mxu0 }
 0x245   : > { %v1445_v48 = vpack.c.bf16 %v1441_v46, %v1438_v41  ;;  %v3777_v49 = vpop.f32.mrb[31].mxu1 }
 0x246   : > { %1386 = vst.msk [vmem:[#allocation2 + $0x38] sm:$0xff] %vm533_vm3, %v1384_v45 }
 0x247   : > { %1447 = vst.msk [vmem:[#allocation3 + $0x38] sm:$0xff] %vm533_vm3, %v1445_v48 }
 0x248 PF: > { %v4190_v50 = vld [vmem:[#allocation9] sm:$0xff]   ;;  %v4623_v51 = vmov 0.0   ;;  %v4191_v52 = vld [vmem:[#allocation9 + $0x8] sm:$0xff]   ;;  %vm4624_vm4 = vmmov 0   ;;  %vm1513_vm5 = vcmask 31744   ;;  %vm1467_vm6 = vcmask 261120  }
 0x249   : > { %3778 = vmatprep.subr.bf16.mxu0 %v4623_v51  ;;  %3786 = vmatprep.subr.bf16.mxu1 %v4623_v51  ;;  %v1512_v53 = vld [vmem:[#allocation2] sm:$0xff]  ;;  %v4192_v61 = vld [vmem:[#allocation9 + $0x10] sm:$0xff]   ;;  %v4193_v62 = vld [vmem:[#allocation9 + $0x18] sm:$0xff]   ;;  %vm1560_vm7 = vcmask 130048   ;;  %vm1788_vm8 = vcmask 1041408   ;;  %vm3174_vm9 = vcmask 253952  }
 0x24a   : > { %3779 = vmatpush3.bf16.msra.mxu0 %v4190_v50  ;;  %3782 = vmatprep.mubr.msk.bf16.mxu0 %vm4624_vm4, %v4623_v51  ;;  %v1518_v54 = vsel %vm1513_vm5, %v1512_v53, 0  ;;  %v5218_v55 = vld [vmem:[%s5059_s2] sm:$0xf]  ;;  %v1678_v16 = vld [vmem:[#allocation2 + $0x8] sm:$0xff]  ;;  %v1784_v36 = vld [vmem:[#allocation13 + $0x2] sm:$0x3] }
 0x24b   : > { %3780 = vmatprep.subr.bf16.mxu0 %v4623_v51  ;;  %3788 = vmatprep.mubr.msk.bf16.mxu1 %vm4624_vm4, %v4623_v51  ;;  %v1573_v9 = vld [vmem:[#allocation3] sm:$0xff]  ;;  %v1683_v19 = vsel %vm1513_vm5, %v1678_v16, 0  ;;  %v1738_v35 = vld [vmem:[#allocation3 + $0x8] sm:$0xff]  ;;  %v1790_v37 = vsel %vm1788_vm8, %v1784_v36, 0  ;;  %v1618_v40 = vld [vmem:[#allocation13] sm:$0x3] }
 0x24c   : > { %3787 = vmatpush3.bf16.xpose.msra.mxu1 %v1518_v54  ;;  %v1836_v43 = vsel %vm1788_vm8, %v1618_v40, 0  ;;  %v4194_v46 = vld [vmem:[#allocation9 + $0x20] sm:$0xff]   ;;  %v1997_v16 = vld [vmem:[#allocation3 + $0x10] sm:$0xff]  ;;  %s5575_s16 = sld [smem:[#allocation27_spill]] }
 0x24d   : > { %3798 = vmatprep.subr.bf16.mxu1 %v4623_v51 }
 0x24e   : > { %3781 = vmatpush3.bf16.msra.mxu0 %v4191_v52  ;;  %v4195_v52 = vld [vmem:[#allocation9 + $0x28] sm:$0xff]  }
 0x24f   : > { %3792 = vmatprep.subr.bf16.mxu0 %v4623_v51 }
 0x251   : > { %3783 = vmatmul.mubr.msk.bf16.vlgmr.msra.gmra.mrb[0].mxu0 %vm1467_vm6, %v5218_v55 }
 0x252   : > { %3794 = vmatprep.mubr.msk.bf16.mxu0 %vm4624_vm4, %v4623_v51  ;;  %3793 = vmatpush3.bf16.msra.mxu0 %v1573_v9  ;;  %p3522_p13 = scmp.ne.s32.totalorder %s5575_s16, 1 }
 0x253   : > { %3806 = vmatprep.subr.bf16.mxu0 %v4623_v51 }
 0x324   : > { %v1505_v56 = vpop.f32.mrb[0].mxu0 }
 0x325   : > { %v1511_v57 = vpack.c.bf16 %v1505_v56, %v1505_v56  ;;  %v3784_v58 = vpop.f32.mrb[1].mxu0 }
 0x326   : > { %v1508_v59 = vpop.f32.mrb[2].mxu0  ;;  %v1937_v58 = vld [vmem:[#allocation2 + $0x10] sm:$0xff] }
 0x327   : > { %v3785_v60 = vpop.f32.mrb[3].mxu0  ;;  %3789 = vmatmul.mubr.msk.bf16.vlgmr.msra.gmra.mrb[0].mxu1 %vm1513_vm5, %v1511_v57  ;;  %v1942_v59 = vsel %vm1513_vm5, %v1937_v58, 0 }
 0x328   : > { %3802 = vmatprep.mubr.msk.bf16.mxu1 %vm4624_vm4, %v4623_v51  ;;  %3799 = vmatpush3.bf16.msra.mxu1 %v4192_v61 }
 0x329   : > { %3800 = vmatprep.subr.bf16.mxu1 %v4623_v51 }
 0x32c   : > { %3801 = vmatpush3.bf16.msra.mxu1 %v4193_v62 }
 0x32d   : > { %3812 = vmatprep.subr.bf16.mxu1 %v4623_v51 }
 0x32f   : > { %3803 = vmatmul.mubr.msk.bf16.vlgmr.msra.gmra.mrb[4].mxu1 %vm1467_vm6, %v5218_v55 }
 0x330   : > { %3814 = vmatprep.mubr.msk.bf16.mxu1 %vm4624_vm4, %v4623_v51  ;;  %3813 = vmatpush3.bf16.msra.mxu1 %v1738_v35 }
 0x331   : > { %3824 = vmatprep.subr.bf16.mxu1 %v4623_v51 }
 0x3fa   : > { %v1554_v63 = vpop.f32.mrb[0].mxu1 }
 0x3fb   : > { %v3790_v0 = vpop.f32.mrb[1].mxu1  ;;  %v1561_v1 = vsel %vm1560_vm7, %v1554_v63, -inf }
 0x3fc   : > { %1562 = vmax.xlane.f32.xlu0 %v1561_v1  ;;  %v1557_v2 = vpop.f32.mrb[2].mxu1 }
 0x3fd   : > { %v3791_v3 = vpop.f32.mrb[3].mxu1 }
 0x402   : > { %v1670_v10 = vpop.f32.mrb[4].mxu1 }
 0x403   : > { %v3804_v11 = vpop.f32.mrb[5].mxu1  ;;  %v1676_v20 = vpack.c.bf16 %v1670_v10, %v1670_v10 }
 0x404   : > { %v1673_v12 = vpop.f32.mrb[6].mxu1 }
 0x405   : > { %v3805_v13 = vpop.f32.mrb[7].mxu1 }
 0x489   : > { %v1563_v4 = vpop.xlane.xlu0 %1562 }
 0x48a   : > { %v1564_v5 = vsub.f32 %v1554_v63, %v1563_v4 }
 0x48c   : > { %v1565_v6 = vmul.f32 1.442695, %v1564_v5 }
 0x48e   : > { %4206 = vpow2.f32 %v1565_v6 }
 0x498   : > { %v4207_v7 = vpop.eup %4206 }
 0x499   : > { %v1567_v8 = vsel %vm1560_vm7, %v4207_v7, 0.0 }
 0x49a   : > { %1568 = vadd.xlane.f32.xlu0 %v1567_v8 }
 0x527   : > { %v1569_v14 = vpop.xlane.xlu0 %1568 }
 0x528   : > { %4208 = vrcp.f32 %v1569_v14 }
 0x532   : > { %v4209_v15 = vpop.eup %4208 }
 0x533   : > { %v1571_v17 = vmul.f32 %v4209_v15, %v4207_v7 }
 0x535   : > { %v1572_v18 = vpack.c.bf16 %v1571_v17, %v1571_v17  ;;  %v2043_v17 = vld [vmem:[#allocation13 + $0x4] sm:$0x3] }
 0x537   : > { %3795 = vmatmul.mubr.msk.bf16.vlgmr.msra.gmra.mrb[4].mxu0 %vm1560_vm7, %v1572_v18  ;;  %v2048_v18 = vsel %vm1788_vm8, %v2043_v17, 0 }
 0x538   : > { %3807 = vmatpush3.bf16.xpose.msra.mxu0 %v1683_v19  ;;  %3808 = vmatprep.mubr.msk.bf16.mxu0 %vm4624_vm4, %v4623_v51 }
 0x539   : > { %3818 = vmatprep.subr.bf16.mxu0 %v4623_v51 }
 0x53f   : > { %3809 = vmatmul.mubr.msk.bf16.vlgmr.msra.gmra.mrb[8].mxu0 %vm1513_vm5, %v1676_v20 }
 0x540   : > { %3820 = vmatprep.mubr.msk.bf16.mxu0 %vm4624_vm4, %v4623_v51  ;;  %3819 = vmatpush3.bf16.msra.mxu0 %v1790_v37 }
 0x541   : > { %3830 = vmatprep.subr.bf16.mxu0 %v4623_v51 }
 0x60a   : > { %v1611_v21 = vpop.f32.mrb[4].mxu0 }
 0x60b   : > { %v3796_v22 = vpop.f32.mrb[5].mxu0  ;;  %v1617_v44 = vpack.c.bf16 %v1611_v21, %v1611_v21 }
 0x60c   : > { %v1614_v23 = vpop.f32.mrb[6].mxu0  ;;  %v4196_v22 = vld [vmem:[#allocation9 + $0x30] sm:$0xff]  }
 0x60d   : > { %v3797_v24 = vpop.f32.mrb[7].mxu0 }
 0x60e   : > { %v4197_v24 = vld [vmem:[#allocation9 + $0x38] sm:$0xff]  }
 0x612   : > { %v1719_v25 = vpop.f32.mrb[8].mxu0 }
 0x613   : > { %v3810_v26 = vpop.f32.mrb[9].mxu0  ;;  %v1725_v27 = vsel %vm1560_vm7, %v1719_v25, -inf }
 0x614   : > { %1726 = vmax.xlane.f32.xlu1 %v1725_v27  ;;  %v1722_v28 = vpop.f32.mrb[10].mxu0 }
 0x615   : > { %v3811_v29 = vpop.f32.mrb[11].mxu0 }
 0x6a1   : > { %v1727_v30 = vpop.xlane.xlu1 %1726 }
 0x6a2   : > { %v1728_v31 = vsub.f32 %v1719_v25, %v1727_v30  ;;  %v2150_v25 = vld [vmem:[#allocation2 + $0x18] sm:$0xff] }
 0x6a3   : > { %v2155_v29 = vsel %vm1513_vm5, %v2150_v25, 0 }
 0x6a4   : > { %v1729_v32 = vmul.f32 1.442695, %v1728_v31 }
 0x6a6   : > { %4210 = vpow2.f32 %v1729_v32 }
 0x6b0   : > { %v4211_v33 = vpop.eup %4210 }
 0x6b1   : > { %v1731_v34 = vsel %vm1560_vm7, %v4211_v33, 0.0 }
 0x6b2   : > { %1732 = vadd.xlane.f32.xlu1 %v1731_v34 }
 0x73f   : > { %v1733_v38 = vpop.xlane.xlu1 %1732 }
 0x740   : > { %4212 = vrcp.f32 %v1733_v38 }
 0x74a   : > { %v4213_v39 = vpop.eup %4212 }
 0x74b   : > { %v1735_v41 = vmul.f32 %v4213_v39, %v4211_v33 }
 0x74d   : > { %v1736_v42 = vpack.c.bf16 %v1735_v41, %v1735_v41 }
 0x74f   : > { %3815 = vmatmul.mubr.msk.bf16.vlgmr.msra.gmra.mrb[8].mxu1 %vm1560_vm7, %v1736_v42 }
 0x750   : > { %3825 = vmatpush3.bf16.msra.mxu1 %v1836_v43  ;;  %3826 = vmatprep.mubr.msk.bf16.mxu1 %vm4624_vm4, %v4623_v51 }
 0x751   : > { %3838 = vmatprep.subr.bf16.mxu1 %v4623_v51 }
 0x757   : > { %3827 = vmatmul.mubr.msk.bf16.vlgmr.msra.gmra.mrb[12].mxu1 %vm1513_vm5, %v1617_v44 }
 0x758   : > { %3840 = vmatprep.mubr.msk.bf16.mxu1 %vm4624_vm4, %v4623_v51 }
 0x759   : > { %3839 = vmatpush3.bf16.xpose.msra.mxu1 %v1942_v59 }
 0x75a   : > { %3850 = vmatprep.subr.bf16.mxu1 %v4623_v51 }
 0x822   : > { %v1776_v45 = vpop.f32.mrb[8].mxu1 }
 0x823   : > { %v1782_v47 = vpack.c.bf16 %v1776_v45, %v1776_v45  ;;  %v3816_v48 = vpop.f32.mrb[9].mxu1 }
 0x824   : > { %v1779_v49 = vpop.f32.mrb[10].mxu1 }
 0x825   : > { %v3817_v50 = vpop.f32.mrb[11].mxu1  ;;  %3821 = vmatmul.mubr.msk.bf16.vlgmr.msra.gmra.mrb[12].mxu0 %vm1513_vm5, %v1782_v47 }
 0x826   : > { %3831 = vmatpush3.bf16.msra.mxu0 %v4194_v46  ;;  %3834 = vmatprep.mubr.msk.bf16.mxu0 %vm4624_vm4, %v4623_v51 }
 0x827   : > { %3832 = vmatprep.subr.bf16.mxu0 %v4623_v51 }
 0x82a   : > { %3833 = vmatpush3.bf16.msra.mxu0 %v4195_v52  ;;  %v1872_v53 = vpop.f32.mrb[12].mxu1 }
 0x82b   : > { %v3828_v54 = vpop.f32.mrb[13].mxu1  ;;  %3844 = vmatprep.subr.bf16.mxu0 %v4623_v51 }
 0x82c   : > { %v1875_v56 = vpop.f32.mrb[14].mxu1  ;;  %v2256_v54 = vld [vmem:[#allocation13 + $0x6] sm:$0x3] }
 0x82d   : > { %v3829_v57 = vpop.f32.mrb[15].mxu1  ;;  %3835 = vmatmul.mubr.msk.bf16.vlgmr.msra.gmra.mrb[16].mxu0 %vm1467_vm6, %v5218_v55  ;;  %v2261_v56 = vsel %vm1788_vm8, %v2256_v54, 0 }
 0x82e   : > { %3846 = vmatprep.mubr.msk.bf16.mxu0 %vm4624_vm4, %v4623_v51  ;;  %3845 = vmatpush3.bf16.msra.mxu0 %v1997_v16 }
 0x82f   : > { %3856 = vmatprep.subr.bf16.mxu0 %v4623_v51 }
 0x8f8   : > { %v1826_v60 = vpop.f32.mrb[12].mxu0 }
 0x8f9   : > { %v5270_v61 = vadd.f32 %v1872_v53, %v1826_v60  ;;  %v3822_v62 = vpop.f32.mrb[13].mxu0  ;;  %v2210_v53 = vld [vmem:[#allocation3 + $0x18] sm:$0xff] }
 0x8fa   : > { %v1829_v63 = vpop.f32.mrb[14].mxu0  ;;  %v4198_v60 = vld [vmem:[#allocation9 + $0x40] sm:$0xff]   ;;  %v4199_v62 = vld [vmem:[#allocation9 + $0x48] sm:$0xff]  }
 0x8fb   : > { %v3823_v0 = vpop.f32.mrb[15].mxu0  ;;  %v2363_v63 = vld [vmem:[#allocation2 + $0x20] sm:$0xff] }
 0x900   : > { %v1929_v1 = vpop.f32.mrb[16].mxu0 }
 0x901   : > { %v1935_v2 = vpack.c.bf16 %v1929_v1, %v1929_v1  ;;  %v3836_v3 = vpop.f32.mrb[17].mxu0 }
 0x902   : > { %v1932_v4 = vpop.f32.mrb[18].mxu0  ;;  %v2368_v3 = vsel %vm1513_vm5, %v2363_v63, 0 }
 0x903   : > { %v3837_v5 = vpop.f32.mrb[19].mxu0  ;;  %3841 = vmatmul.mubr.msk.bf16.vlgmr.msra.gmra.mrb[16].mxu1 %vm1513_vm5, %v1935_v2 }
 0x904   : > { %3852 = vmatprep.mubr.msk.bf16.mxu1 %vm4624_vm4, %v4623_v51  ;;  %3851 = vmatpush3.bf16.msra.mxu1 %v2048_v18 }
 0x905   : > { %3864 = vmatprep.subr.bf16.mxu1 %v4623_v51 }
 0x9d6   : > { %v1978_v6 = vpop.f32.mrb[16].mxu1 }
 0x9d7   : > { %v3842_v7 = vpop.f32.mrb[17].mxu1  ;;  %v1984_v8 = vsel %vm1560_vm7, %v1978_v6, -inf }
 0x9d8   : > { %1985 = vmax.xlane.f32.xlu0 %v1984_v8  ;;  %v1981_v9 = vpop.f32.mrb[18].mxu1 }
 0x9d9   : > { %v3843_v10 = vpop.f32.mrb[19].mxu1 }
 0xa65   : > { %v1986_v11 = vpop.xlane.xlu0 %1985 }
 0xa66   : > { %v1987_v12 = vsub.f32 %v1978_v6, %v1986_v11 }
 0xa68   : > { %v1988_v13 = vmul.f32 1.442695, %v1987_v12 }
 0xa6a   : > { %4214 = vpow2.f32 %v1988_v13 }
 0xa74   : > { %v4215_v14 = vpop.eup %4214 }
 0xa75   : > { %v1990_v15 = vsel %vm1560_vm7, %v4215_v14, 0.0 }
 0xa76   : > { %1991 = vadd.xlane.f32.xlu1 %v1990_v15 }
 0xb03   : > { %v1992_v19 = vpop.xlane.xlu1 %1991 }
 0xb04   : > { %4216 = vrcp.f32 %v1992_v19 }
 0xb0e   : > { %v4217_v20 = vpop.eup %4216 }
 0xb0f   : > { %v1994_v21 = vmul.f32 %v4217_v20, %v4215_v14 }
 0xb11   : > { %v1995_v23 = vpack.c.bf16 %v1994_v21, %v1994_v21 }
 0xb13   : > { %3847 = vmatmul.mubr.msk.bf16.vlgmr.msra.gmra.mrb[20].mxu0 %vm1560_vm7, %v1995_v23 }
 0xb14   : > { %3857 = vmatpush3.bf16.msra.mxu0 %v4196_v22  ;;  %3860 = vmatprep.mubr.msk.bf16.mxu0 %vm4624_vm4, %v4623_v51 }
 0xb15   : > { %3858 = vmatprep.subr.bf16.mxu0 %v4623_v51 }
 0xb18   : > { %3859 = vmatpush3.bf16.msra.mxu0 %v4197_v24 }
 0xb19   : > { %3870 = vmatprep.subr.bf16.mxu0 %v4623_v51 }
 0xb1b   : > { %3861 = vmatmul.mubr.msk.bf16.vlgmr.msra.gmra.mrb[24].mxu0 %vm1467_vm6, %v5218_v55 }
 0xb1c   : > { %3872 = vmatprep.mubr.msk.bf16.mxu0 %vm4624_vm4, %v4623_v51  ;;  %3871 = vmatpush3.bf16.msra.mxu0 %v2210_v53 }
 0xb1d   : > { %3882 = vmatprep.subr.bf16.mxu0 %v4623_v51 }
 0xbe6   : > { %v2035_v26 = vpop.f32.mrb[20].mxu0 }
 0xbe7   : > { %v2041_v27 = vpack.c.bf16 %v2035_v26, %v2035_v26  ;;  %v3848_v28 = vpop.f32.mrb[21].mxu0  ;;  %v2423_v26 = vld [vmem:[#allocation3 + $0x20] sm:$0xff] }
 0xbe8   : > { %v2038_v30 = vpop.f32.mrb[22].mxu0 }
 0xbe9   : > { %v3849_v31 = vpop.f32.mrb[23].mxu0  ;;  %3853 = vmatmul.mubr.msk.bf16.vlgmr.msra.gmra.mrb[20].mxu1 %vm1513_vm5, %v2041_v27  ;;  %v2469_v27 = vld [vmem:[#allocation13 + $0x8] sm:$0x3] }
 0xbea   : > { %3865 = vmatpush3.bf16.xpose.msra.mxu1 %v2155_v29  ;;  %3866 = vmatprep.mubr.msk.bf16.mxu1 %vm4624_vm4, %v4623_v51  ;;  %v2474_v28 = vsel %vm1788_vm8, %v2469_v27, 0 }
 0xbeb   : > { %3876 = vmatprep.subr.bf16.mxu1 %v4623_v51 }
 0xbee   : > { %v2142_v32 = vpop.f32.mrb[24].mxu0 }
 0xbef   : > { %v2148_v33 = vpack.c.bf16 %v2142_v32, %v2142_v32  ;;  %v3862_v34 = vpop.f32.mrb[25].mxu0  ;;  %v4200_v32 = vld [vmem:[#allocation9 + $0x50] sm:$0xff]  }
 0xbf0   : > { %v2145_v35 = vpop.f32.mrb[26].mxu0  ;;  %v4201_v34 = vld [vmem:[#allocation9 + $0x58] sm:$0xff]  }
 0xbf1   : > { %v3863_v36 = vpop.f32.mrb[27].mxu0  ;;  %3867 = vmatmul.mubr.msk.bf16.vlgmr.msra.gmra.mrb[24].mxu1 %vm1513_vm5, %v2148_v33  ;;  %v2576_v35 = vld [vmem:[#allocation2 + $0x28] sm:$0xff] }
 0xbf2   : > { %3878 = vmatprep.mubr.msk.bf16.mxu1 %vm4624_vm4, %v4623_v51  ;;  %3877 = vmatpush3.bf16.msra.mxu1 %v2261_v56 }
 0xbf3   : > { %3890 = vmatprep.subr.bf16.mxu1 %v4623_v51 }
 0xcbc   : > { %v2084_v37 = vpop.f32.mrb[20].mxu1 }
 0xcbd   : > { %v2090_v38 = vadd.f32 %v2084_v37, %v5270_v61  ;;  %v3854_v39 = vpop.f32.mrb[21].mxu1 }
 0xcbe   : > { %v2087_v40 = vpop.f32.mrb[22].mxu1  ;;  %v2581_v39 = vsel %vm1513_vm5, %v2576_v35, 0 }
 0xcbf   : > { %v3855_v41 = vpop.f32.mrb[23].mxu1 }
 0xcc4   : > { %v2191_v42 = vpop.f32.mrb[24].mxu1 }
 0xcc5   : > { %v3868_v43 = vpop.f32.mrb[25].mxu1  ;;  %v2197_v44 = vsel %vm1560_vm7, %v2191_v42, -inf }
 0xcc6   : > { %2198 = vmax.xlane.f32.xlu0 %v2197_v44  ;;  %v2194_v45 = vpop.f32.mrb[26].mxu1 }
 0xcc7   : > { %v3869_v46 = vpop.f32.mrb[27].mxu1 }
 0xd53   : > { %v2199_v47 = vpop.xlane.xlu0 %2198 }
 0xd54   : > { %v2200_v48 = vsub.f32 %v2191_v42, %v2199_v47 }
 0xd56   : > { %v2201_v49 = vmul.f32 1.442695, %v2200_v48 }
 0xd58   : > { %4218 = vpow2.f32 %v2201_v49 }
 0xd62   : > { %v4219_v50 = vpop.eup %4218 }
 0xd63   : > { %v2203_v52 = vsel %vm1560_vm7, %v4219_v50, 0.0 }
 0xd64   : > { %2204 = vadd.xlane.f32.xlu1 %v2203_v52 }
 0xdf1   : > { %v2205_v57 = vpop.xlane.xlu1 %2204 }
 0xdf2   : > { %4220 = vrcp.f32 %v2205_v57 }
 0xdfc   : > { %v4221_v58 = vpop.eup %4220 }
 0xdfd   : > { %v2207_v59 = vmul.f32 %v4221_v58, %v4219_v50 }
 0xdff   : > { %v2208_v61 = vpack.c.bf16 %v2207_v59, %v2207_v59 }
 0xe01   : > { %3873 = vmatmul.mubr.msk.bf16.vlgmr.msra.gmra.mrb[28].mxu0 %vm1560_vm7, %v2208_v61 }
 0xe02   : > { %3883 = vmatpush3.bf16.msra.mxu0 %v4198_v60  ;;  %3886 = vmatprep.mubr.msk.bf16.mxu0 %vm4624_vm4, %v4623_v51 }
 0xe03   : > { %3884 = vmatprep.subr.bf16.mxu0 %v4623_v51 }
 0xe06   : > { %3885 = vmatpush3.bf16.msra.mxu0 %v4199_v62 }
 0xe07   : > { %3896 = vmatprep.subr.bf16.mxu0 %v4623_v51 }
 0xe09   : > { %3887 = vmatmul.mubr.msk.bf16.vlgmr.msra.gmra.mrb[32].mxu0 %vm1467_vm6, %v5218_v55 }
 0xe0a   : > { %3898 = vmatprep.mubr.msk.bf16.mxu0 %vm4624_vm4, %v4623_v51  ;;  %3897 = vmatpush3.bf16.msra.mxu0 %v2423_v26 }
 0xe0b   : > { %3908 = vmatprep.subr.bf16.mxu0 %v4623_v51 }
 0xed4   : > { %v2248_v0 = vpop.f32.mrb[28].mxu0 }
 0xed5   : > { %v2254_v1 = vpack.c.bf16 %v2248_v0, %v2248_v0  ;;  %v3874_v2 = vpop.f32.mrb[29].mxu0  ;;  %v2636_v0 = vld [vmem:[#allocation3 + $0x28] sm:$0xff] }
 0xed6   : > { %v2251_v4 = vpop.f32.mrb[30].mxu0 }
 0xed7   : > { %v3875_v5 = vpop.f32.mrb[31].mxu0  ;;  %3879 = vmatmul.mubr.msk.bf16.vlgmr.msra.gmra.mrb[28].mxu1 %vm1513_vm5, %v2254_v1  ;;  %v2682_v1 = vld [vmem:[#allocation13 + $0xa] sm:$0x3] }
 0xed8   : > { %3891 = vmatpush3.bf16.xpose.msra.mxu1 %v2368_v3  ;;  %3892 = vmatprep.mubr.msk.bf16.mxu1 %vm4624_vm4, %v4623_v51  ;;  %v2687_v2 = vsel %vm1788_vm8, %v2682_v1, 0 }
 0xed9   : > { %3902 = vmatprep.subr.bf16.mxu1 %v4623_v51 }
 0xedc   : > { %v2355_v6 = vpop.f32.mrb[32].mxu0 }
 0xedd   : > { %v2361_v7 = vpack.c.bf16 %v2355_v6, %v2355_v6  ;;  %v3888_v8 = vpop.f32.mrb[33].mxu0  ;;  %v4202_v6 = vld [vmem:[#allocation9 + $0x60] sm:$0xff]  }
 0xede   : > { %v2358_v9 = vpop.f32.mrb[34].mxu0  ;;  %v4203_v8 = vld [vmem:[#allocation9 + $0x68] sm:$0xff]  }
 0xedf   : > { %v3889_v10 = vpop.f32.mrb[35].mxu0  ;;  %3893 = vmatmul.mubr.msk.bf16.vlgmr.msra.gmra.mrb[32].mxu1 %vm1513_vm5, %v2361_v7  ;;  %v2789_v9 = vld [vmem:[#allocation2 + $0x30] sm:$0xff] }
 0xee0   : > { %3904 = vmatprep.mubr.msk.bf16.mxu1 %vm4624_vm4, %v4623_v51  ;;  %3903 = vmatpush3.bf16.msra.mxu1 %v2474_v28 }
 0xee1   : > { %3916 = vmatprep.subr.bf16.mxu1 %v4623_v51 }
 0xfaa   : > { %v2297_v11 = vpop.f32.mrb[28].mxu1 }
 0xfab   : > { %v2303_v12 = vadd.f32 %v2297_v11, %v2090_v38  ;;  %v3880_v13 = vpop.f32.mrb[29].mxu1 }
 0xfac   : > { %v2300_v14 = vpop.f32.mrb[30].mxu1  ;;  %v2794_v13 = vsel %vm1513_vm5, %v2789_v9, 0  ;;  %v3108_v9 = vld [vmem:[#allocation13 + $0xe] sm:$0x3] }
 0xfad   : > { %v3881_v15 = vpop.f32.mrb[31].mxu1 }
 0xfb2   : > { %v2404_v16 = vpop.f32.mrb[32].mxu1 }
 0xfb3   : > { %v3894_v17 = vpop.f32.mrb[33].mxu1  ;;  %v2410_v18 = vsel %vm1560_vm7, %v2404_v16, -inf }
 0xfb4   : > { %2411 = vmax.xlane.f32.xlu0 %v2410_v18  ;;  %v2407_v19 = vpop.f32.mrb[34].mxu1 }
 0xfb5   : > { %v3895_v20 = vpop.f32.mrb[35].mxu1 }
0x1041   : > { %v2412_v21 = vpop.xlane.xlu0 %2411 }
0x1042   : > { %v2413_v22 = vsub.f32 %v2404_v16, %v2412_v21 }
0x1044   : > { %v2414_v23 = vmul.f32 1.442695, %v2413_v22 }
0x1046   : > { %4222 = vpow2.f32 %v2414_v23 }
0x1050   : > { %v4223_v24 = vpop.eup %4222 }
0x1051   : > { %v2416_v25 = vsel %vm1560_vm7, %v4223_v24, 0.0 }
0x1052   : > { %2417 = vadd.xlane.f32.xlu1 %v2416_v25 }
0x10df   : > { %v2418_v29 = vpop.xlane.xlu1 %2417 }
0x10e0   : > { %4224 = vrcp.f32 %v2418_v29 }
0x10ea   : > { %v4225_v30 = vpop.eup %4224 }
0x10eb   : > { %v2420_v31 = vmul.f32 %v4225_v30, %v4223_v24 }
0x10ed   : > { %v2421_v33 = vpack.c.bf16 %v2420_v31, %v2420_v31 }
0x10ef   : > { %3899 = vmatmul.mubr.msk.bf16.vlgmr.msra.gmra.mrb[36].mxu0 %vm1560_vm7, %v2421_v33 }
0x10f0   : > { %3909 = vmatpush3.bf16.msra.mxu0 %v4200_v32  ;;  %3912 = vmatprep.mubr.msk.bf16.mxu0 %vm4624_vm4, %v4623_v51 }
0x10f1   : > { %3910 = vmatprep.subr.bf16.mxu0 %v4623_v51 }
0x10f4   : > { %3911 = vmatpush3.bf16.msra.mxu0 %v4201_v34 }
0x10f5   : > { %3922 = vmatprep.subr.bf16.mxu0 %v4623_v51 }
0x10f7   : > { %3913 = vmatmul.mubr.msk.bf16.vlgmr.msra.gmra.mrb[40].mxu0 %vm1467_vm6, %v5218_v55 }
0x10f8   : > { %3924 = vmatprep.mubr.msk.bf16.mxu0 %vm4624_vm4, %v4623_v51  ;;  %3923 = vmatpush3.bf16.msra.mxu0 %v2636_v0 }
0x10f9   : > { %3934 = vmatprep.subr.bf16.mxu0 %v4623_v51 }
0x11c2   : > { %v2461_v36 = vpop.f32.mrb[36].mxu0 }
0x11c3   : > { %v2467_v37 = vpack.c.bf16 %v2461_v36, %v2461_v36  ;;  %v3900_v38 = vpop.f32.mrb[37].mxu0  ;;  %v2849_v36 = vld [vmem:[#allocation3 + $0x30] sm:$0xff] }
0x11c4   : > { %v2464_v40 = vpop.f32.mrb[38].mxu0 }
0x11c5   : > { %v3901_v41 = vpop.f32.mrb[39].mxu0  ;;  %3905 = vmatmul.mubr.msk.bf16.vlgmr.msra.gmra.mrb[36].mxu1 %vm1513_vm5, %v2467_v37  ;;  %v2895_v37 = vld [vmem:[#allocation13 + $0xc] sm:$0x3] }
0x11c6   : > { %3917 = vmatpush3.bf16.xpose.msra.mxu1 %v2581_v39  ;;  %3918 = vmatprep.mubr.msk.bf16.mxu1 %vm4624_vm4, %v4623_v51  ;;  %v2900_v38 = vsel %vm1788_vm8, %v2895_v37, 0 }
0x11c7   : > { %3928 = vmatprep.subr.bf16.mxu1 %v4623_v51 }
0x11ca   : > { %v2568_v42 = vpop.f32.mrb[40].mxu0 }
0x11cb   : > { %v2574_v43 = vpack.c.bf16 %v2568_v42, %v2568_v42  ;;  %v3914_v44 = vpop.f32.mrb[41].mxu0  ;;  %v4204_v42 = vld [vmem:[#allocation9 + $0x70] sm:$0xff]  }
0x11cc   : > { %v2571_v45 = vpop.f32.mrb[42].mxu0  ;;  %v4205_v44 = vld [vmem:[#allocation9 + $0x78] sm:$0xff]  }
0x11cd   : > { %v3915_v46 = vpop.f32.mrb[43].mxu0  ;;  %3919 = vmatmul.mubr.msk.bf16.vlgmr.msra.gmra.mrb[40].mxu1 %vm1513_vm5, %v2574_v43  ;;  %v3002_v45 = vld [vmem:[#allocation2 + $0x38] sm:$0xff] }
0x11ce   : > { %3930 = vmatprep.mubr.msk.bf16.mxu1 %vm4624_vm4, %v4623_v51  ;;  %3929 = vmatpush3.bf16.msra.mxu1 %v2687_v2 }
0x11cf   : > { %3942 = vmatprep.subr.bf16.mxu1 %v4623_v51 }
0x1298   : > { %v2510_v47 = vpop.f32.mrb[36].mxu1 }
0x1299   : > { %v2516_v48 = vadd.f32 %v2510_v47, %v2303_v12  ;;  %v3906_v49 = vpop.f32.mrb[37].mxu1 }
0x129a   : > { %v2513_v50 = vpop.f32.mrb[38].mxu1  ;;  %v3007_v49 = vsel %vm1513_vm5, %v3002_v45, 0 }
0x129b   : > { %v3907_v52 = vpop.f32.mrb[39].mxu1 }
0x12a0   : > { %v2617_v53 = vpop.f32.mrb[40].mxu1 }
0x12a1   : > { %v3920_v54 = vpop.f32.mrb[41].mxu1  ;;  %v2623_v56 = vsel %vm1560_vm7, %v2617_v53, -inf }
0x12a2   : > { %2624 = vmax.xlane.f32.xlu0 %v2623_v56  ;;  %v2620_v57 = vpop.f32.mrb[42].mxu1 }
0x12a3   : > { %v3921_v58 = vpop.f32.mrb[43].mxu1 }
0x132f   : > { %v2625_v59 = vpop.xlane.xlu0 %2624 }
0x1330   : > { %v2626_v60 = vsub.f32 %v2617_v53, %v2625_v59 }
0x1332   : > { %v2627_v61 = vmul.f32 1.442695, %v2626_v60 }
0x1334   : > { %4226 = vpow2.f32 %v2627_v61 }
0x133e   : > { %v4227_v62 = vpop.eup %4226 }
0x133f   : > { %v2629_v63 = vsel %vm1560_vm7, %v4227_v62, 0.0 }
0x1340   : > { %2630 = vadd.xlane.f32.xlu1 %v2629_v63 }
0x13cd   : > { %v2631_v3 = vpop.xlane.xlu1 %2630 }
0x13ce   : > { %4228 = vrcp.f32 %v2631_v3 }
0x13d8   : > { %v4229_v4 = vpop.eup %4228 }
0x13d9   : > { %v2633_v5 = vmul.f32 %v4229_v4, %v4227_v62 }
0x13db   : > { %v2634_v7 = vpack.c.bf16 %v2633_v5, %v2633_v5 }
0x13dd   : > { %3925 = vmatmul.mubr.msk.bf16.vlgmr.msra.gmra.mrb[44].mxu0 %vm1560_vm7, %v2634_v7 }
0x13de   : > { %3935 = vmatpush3.bf16.msra.mxu0 %v4202_v6  ;;  %3938 = vmatprep.mubr.msk.bf16.mxu0 %vm4624_vm4, %v4623_v51 }
0x13df   : > { %3936 = vmatprep.subr.bf16.mxu0 %v4623_v51 }
0x13e2   : > { %3937 = vmatpush3.bf16.msra.mxu0 %v4203_v8 }
0x13e3   : > { %3948 = vmatprep.subr.bf16.mxu0 %v4623_v51 }
0x13e5   : > { %3939 = vmatmul.mubr.msk.bf16.vlgmr.msra.gmra.mrb[48].mxu0 %vm1467_vm6, %v5218_v55 }
0x13e6   : > { %3950 = vmatprep.mubr.msk.bf16.mxu0 %vm4624_vm4, %v4623_v51  ;;  %3949 = vmatpush3.bf16.msra.mxu0 %v2849_v36 }
0x13e7   : > { %3960 = vmatprep.subr.bf16.mxu0 %v4623_v51 }
0x14b0   : > { %v2674_v10 = vpop.f32.mrb[44].mxu0 }
0x14b1   : > { %v2680_v11 = vpack.c.bf16 %v2674_v10, %v2674_v10  ;;  %v3926_v12 = vpop.f32.mrb[45].mxu0  ;;  %v3113_v10 = vsel %vm1788_vm8, %v3108_v9, 0 }
0x14b2   : > { %v2677_v14 = vpop.f32.mrb[46].mxu0 }
0x14b3   : > { %v3927_v15 = vpop.f32.mrb[47].mxu0  ;;  %3931 = vmatmul.mubr.msk.bf16.vlgmr.msra.gmra.mrb[44].mxu1 %vm1513_vm5, %v2680_v11 }
0x14b4   : > { %3943 = vmatpush3.bf16.xpose.msra.mxu1 %v2794_v13  ;;  %3944 = vmatprep.mubr.msk.bf16.mxu1 %vm4624_vm4, %v4623_v51 }
0x14b5   : > { %3954 = vmatprep.subr.bf16.mxu1 %v4623_v51 }
0x14b8   : > { %v2781_v16 = vpop.f32.mrb[48].mxu0 }
0x14b9   : > { %v2787_v17 = vpack.c.bf16 %v2781_v16, %v2781_v16  ;;  %v3940_v18 = vpop.f32.mrb[49].mxu0 }
0x14ba   : > { %v2784_v19 = vpop.f32.mrb[50].mxu0 }
0x14bb   : > { %v3941_v20 = vpop.f32.mrb[51].mxu0  ;;  %3945 = vmatmul.mubr.msk.bf16.vlgmr.msra.gmra.mrb[48].mxu1 %vm1513_vm5, %v2787_v17 }
0x14bc   : > { %3956 = vmatprep.mubr.msk.bf16.mxu1 %vm4624_vm4, %v4623_v51  ;;  %3955 = vmatpush3.bf16.msra.mxu1 %v2900_v38 }
0x14bd   : > { %3968 = vmatprep.subr.bf16.mxu1 %v4623_v51 }
0x1586   : > { %v2723_v21 = vpop.f32.mrb[44].mxu1 }
0x1587   : > { %v2729_v22 = vadd.f32 %v2723_v21, %v2516_v48  ;;  %v3932_v23 = vpop.f32.mrb[45].mxu1  ;;  %v3521_v21 = vld [vmem:[#allocation15] ss:$0 sm:$0xff] }
0x1588   : > { %v2726_v24 = vpop.f32.mrb[46].mxu1 }
0x1589   : > { %v3933_v25 = vpop.f32.mrb[47].mxu1 }
0x158e   : > { %v2830_v26 = vpop.f32.mrb[48].mxu1 }
0x158f   : > { %v3946_v27 = vpop.f32.mrb[49].mxu1  ;;  %v2836_v28 = vsel %vm1560_vm7, %v2830_v26, -inf }
0x1590   : > { %2837 = vmax.xlane.f32.xlu0 %v2836_v28  ;;  %v2833_v29 = vpop.f32.mrb[50].mxu1 }
0x1591   : > { %v3947_v30 = vpop.f32.mrb[51].mxu1 }
0x161d   : > { %v2838_v31 = vpop.xlane.xlu0 %2837 }
0x161e   : > { %v2839_v32 = vsub.f32 %v2830_v26, %v2838_v31 }
0x1620   : > { %v2840_v33 = vmul.f32 1.442695, %v2839_v32 }
0x1622   : > { %4230 = vpow2.f32 %v2840_v33  ;;  %v3165_v33 = vld [vmem:[%s5090_s17] sm:$0x1] }
0x162c   : > { %v4231_v34 = vpop.eup %4230 }
0x162d   : > { %v2842_v35 = vsel %vm1560_vm7, %v4231_v34, 0.0 }
0x162e   : > { %2843 = vadd.xlane.f32.xlu1 %v2842_v35 }
0x16bb   : > { %v2844_v39 = vpop.xlane.xlu1 %2843 }
0x16bc   : > { %4232 = vrcp.f32 %v2844_v39 }
0x16c6   : > { %v4233_v40 = vpop.eup %4232 }
0x16c7   : > { %v2846_v41 = vmul.f32 %v4233_v40, %v4231_v34 }
0x16c9   : > { %v2847_v43 = vpack.c.bf16 %v2846_v41, %v2846_v41 }
0x16cb   : > { %3951 = vmatmul.mubr.msk.bf16.vlgmr.msra.gmra.mrb[52].mxu0 %vm1560_vm7, %v2847_v43 }
0x16cc   : > { %3961 = vmatpush3.bf16.msra.mxu0 %v4204_v42  ;;  %3964 = vmatprep.mubr.msk.bf16.mxu0 %vm4624_vm4, %v4623_v51 }
0x16cd   : > { %3962 = vmatprep.subr.bf16.mxu0 %v4623_v51 }
0x16d0   : > { %3963 = vmatpush3.bf16.msra.mxu0 %v4205_v44 }
0x16d1   : > { %3974 = vmatprep.subr.bf16.mxu0 %v4623_v51 }
0x16d3   : > { %3965 = vmatmul.mubr.msk.bf16.vlgmr.msra.gmra.mrb[56].mxu0 %vm1467_vm6, %v5218_v55 }
0x16d4   : > { %3976 = vmatprep.mubr.msk.bf16.mxu0 %vm4624_vm4, %v4623_v51 }
0x179e   : > { %v2887_v46 = vpop.f32.mrb[52].mxu0 }
0x179f   : > { %v2893_v47 = vpack.c.bf16 %v2887_v46, %v2887_v46  ;;  %v3952_v48 = vpop.f32.mrb[53].mxu0 }
0x17a0   : > { %v2890_v50 = vpop.f32.mrb[54].mxu0 }
0x17a1   : > { %v3953_v52 = vpop.f32.mrb[55].mxu0  ;;  %3957 = vmatmul.mubr.msk.bf16.vlgmr.msra.gmra.mrb[52].mxu1 %vm1513_vm5, %v2893_v47 }
0x17a2   : > { %3969 = vmatpush3.bf16.xpose.msra.mxu1 %v3007_v49  ;;  %3970 = vmatprep.mubr.msk.bf16.mxu1 %vm4624_vm4, %v4623_v51 }
0x17a3   : > { %3980 = vmatprep.subr.bf16.mxu1 %v4623_v51 }
0x17a6   : > { %v2994_v55 = vpop.f32.mrb[56].mxu0 }
0x17a7   : > { %v3000_v53 = vpack.c.bf16 %v2994_v55, %v2994_v55  ;;  %v3966_v54 = vpop.f32.mrb[57].mxu0 }
0x17a8   : > { %v2997_v56 = vpop.f32.mrb[58].mxu0 }
0x17a9   : > { %v3967_v57 = vpop.f32.mrb[59].mxu0  ;;  %3971 = vmatmul.mubr.msk.bf16.vlgmr.msra.gmra.mrb[56].mxu1 %vm1513_vm5, %v3000_v53 }
0x17aa   : > { %3982 = vmatprep.mubr.msk.bf16.mxu1 %vm4624_vm4, %v4623_v51  ;;  %v3062_v51 = vld [vmem:[#allocation3 + $0x38] sm:$0xff]  ;;  %3981 = vmatpush3.bf16.msra.mxu1 %v3113_v10 }
0x17ab   : > { %3975 = vmatpush3.bf16.msra.mxu0 %v3062_v51 }
0x1874   : > { %v2936_v58 = vpop.f32.mrb[52].mxu1 }
0x1875   : > { %v2942_v59 = vadd.f32 %v2936_v58, %v2729_v22  ;;  %v3958_v60 = vpop.f32.mrb[53].mxu1 }
0x1876   : > { %v2939_v61 = vpop.f32.mrb[54].mxu1 }
0x1877   : > { %v3959_v62 = vpop.f32.mrb[55].mxu1 }
0x187c   : > { %v3043_v63 = vpop.f32.mrb[56].mxu1 }
0x187d   : > { %v3972_v0 = vpop.f32.mrb[57].mxu1  ;;  %v3049_v1 = vsel %vm1560_vm7, %v3043_v63, -inf }
0x187e   : > { %3050 = vmax.xlane.f32.xlu0 %v3049_v1  ;;  %v3046_v2 = vpop.f32.mrb[58].mxu1 }
0x187f   : > { %v3973_v3 = vpop.f32.mrb[59].mxu1 }
0x190b   : > { %v3051_v4 = vpop.xlane.xlu0 %3050 }
0x190c   : > { %v3052_v5 = vsub.f32 %v3043_v63, %v3051_v4 }
0x190e   : > { %v3053_v6 = vmul.f32 1.442695, %v3052_v5 }
0x1910   : > { %4234 = vpow2.f32 %v3053_v6 }
0x191a   : > { %v4235_v7 = vpop.eup %4234 }
0x191b   : > { %v3055_v8 = vsel %vm1560_vm7, %v4235_v7, 0.0 }
0x191c   : > { %3056 = vadd.xlane.f32.xlu1 %v3055_v8 }
0x19a9   : > { %v3057_v11 = vpop.xlane.xlu1 %3056 }
0x19aa   : > { %4236 = vrcp.f32 %v3057_v11 }
0x19b4   : > { %v4237_v12 = vpop.eup %4236 }
0x19b5   : > { %v3059_v13 = vmul.f32 %v4237_v12, %v4235_v7 }
0x19b7   : > { %v3060_v14 = vpack.c.bf16 %v3059_v13, %v3059_v13 }
0x19b9   : > { %3977 = vmatmul.mubr.msk.bf16.vlgmr.msra.gmra.mrb[60].mxu0 %vm1560_vm7, %v3060_v14 }
0x1a8c   : > { %v3100_v15 = vpop.f32.mrb[60].mxu0 }
0x1a8d   : > { %v3106_v16 = vpack.c.bf16 %v3100_v15, %v3100_v15  ;;  %v3978_v17 = vpop.f32.mrb[61].mxu0 }
0x1a8e   : > { %v3103_v18 = vpop.f32.mrb[62].mxu0 }
0x1a8f   : > { %v3979_v19 = vpop.f32.mrb[63].mxu0  ;;  %3983 = vmatmul.mubr.msk.bf16.vlgmr.msra.gmra.mrb[60].mxu1 %vm1513_vm5, %v3106_v16 }
0x1b62   : > { %v3149_v20 = vpop.f32.mrb[60].mxu1 }
0x1b63   : > { %v3155_v22 = vadd.f32 %v3149_v20, %v2942_v59  ;;  %v3984_v23 = vpop.f32.mrb[61].mxu1 }
0x1b64   : > { %v3152_v24 = vpop.f32.mrb[62].mxu1 }
0x1b65   : > { %v3163_v25 = vadd.f32 %v3521_v21, %v3155_v22  ;;  %v3985_v26 = vpop.f32.mrb[63].mxu1 }
0x1b67   : > { %3164 = vst.msk [vmem:[%s5087_s23] sm:$0xff] %vm1467_vm6, %v3163_v25  ;;  %v3166_v27 = vsel %vm1467_vm6, %v3163_v25, 0.0 }
0x1b68   : > { %v3167_v28 = vrot.slane %v3166_v27, 4 }
0x1b6a   : > { %v3168_v29 = vadd.f32 %v3167_v28, %v3166_v27 }
0x1b6c   : > { %v3169_v30 = vrot.slane %v3168_v29, 2 }
0x1b6e   : > { %v3170_v31 = vadd.f32 %v3169_v30, %v3168_v29 }
0x1b70   : > { %v3171_v32 = vrot.slane %v3170_v31, 1  ;;  %3179 = sbr.rel (%p3522_p13) target bundleno = 7041 (0x1b81), region = 84 }
0x1b72   : > { %v3172_v34 = vadd.f32 %v3171_v32, %v3170_v31 }
0x1b74   : > { %v3173_v35 = vadd.f32 %v3172_v34, %v3165_v33 }
0x1b76   : > { %3175 = vst.msk [vmem:[%s5090_s17] sm:$0x1] %vm3174_vm9, %v3173_v35 }
0x1b7d   : > { %v3180_v36 = vld [vmem:[%s5090_s17] sm:$0x1] }
0x1b7e   : > { %v3181_v37 = vmul.f32 0.0625, %v3180_v36 }
0x1b80   : > { %3182 = vst.msk [vmem:[%s5090_s17] sm:$0x1] %vm3174_vm9, %v3181_v37 }
0x1b81 PF: > { %s5576_s26 = sld [smem:[#allocation28_spill]]  ;;  %s5577_s18 = sld [smem:[#allocation27_spill]] }
0x1b82   : > { %s3203_s5 = sshll.u32 %s5087_s23, 4  ;;  %s5578_s13 = sld [smem:[#allocation42_spill]]  ;;  %s5402_s5 = int_to_ptr.vmem [resolvable:$true] %s3203_s5 }
0x1b83   : > { %s3184_s19 = scalar_lea.sflag [#allocation6], %s5055_s10  ;;  %s4438_s1 = scalar_lea.vmem %s5402_s5, 128 }
0x1b84   : > { %p4439_p10 = scmp.ne.s32.totalorder %s5402_s5, %s4438_s1  ;;  %p5580_p1 = scmp.ne.s32.totalorder %s5554_s24, 0 }
0x1b85   : > { %s4625_s11 = smov [#allocation16]  }
0x1b86   : > { %p4440_p3 = pnand %p4439_p10, %p5580_p1  ;;  %s4442_s16 = sshll.u32 %s4625_s11, 4  ;;  %s4443_s16 = int_to_ptr.vmem [resolvable:$false] %s4442_s16 }
0x1b87   : > { %s3524_s22 = sshll.u32 %s5576_s26, 1  ;;  %s4444_s23 = scalar_lea.vmem %s4443_s16, 256 }
0x1b88   : > { %s3199_s7 = sadd.s32 %s5577_s18, %s3524_s22  ;;  %s5579_s25 = smov %s5578_s13 }
0x1b89   : > { %s3525_s6 = sshll.u32 %s3199_s7, 7  ;;  %p4441_p2 = pneg %p4440_p3 }
0x1b8a   : > { %s3201_s4 = scalar_lea.hbm %s5578_s13, %s3525_s6  ;;  %p4445_p9 = scmp.lt.s32.totalorder %s5402_s5, %s4443_s16 }
0x1b8b   : > { %p4446_p12 = scmp.lt.s32.totalorder %s4444_s23, %s4438_s1 }
0x1b8d   : > { %p4447_p11 = por %p4446_p12, %p4445_p9 }
0x1b8f   : > { %p4448_p8 = pnand %p4447_p11, %p4441_p2 }
0x1b91   : > { %4451 = shalt.err (!%p4448_p8)
}
0x1b92   : > { %s4452_s18 = scalar_lea.hbm %s3201_s4, 128  ;;  %s4456_s7 = scalar_lea.hbm %s5579_s25, 512 }
0x1b93   : > { %p4453_p6 = scmp.ne.s32.totalorder %s3201_s4, %s4452_s18  ;;  %p4457_p0 = scmp.lt.u32.totalorder %s3201_s4, %s5579_s25 }
0x1b94   : > { %p4458_p7 = scmp.lt.u32.totalorder %s4456_s7, %s4452_s18  ;;  %p4460_p10 = scmp.lt.u32.totalorder %s4452_s18, %s3201_s4 }
0x1b95   : > { %p4454_p5 = pnand %p4453_p6, %p5580_p1 }
0x1b96   : > { %p4459_p13 = por %p4458_p7, %p4457_p0 }
0x1b97   : > { %p4455_p4 = pneg %p4454_p5 }
0x1b98   : > { %p4461_p3 = por %p4460_p10, %p4459_p13 }
0x1b9a   : > { %p4462_p2 = pnand %p4461_p3, %p4455_p4 }
0x1b9c   : > { %4465 = shalt.err (!%p4462_p2)
}
0x1b9d   : > { %4010 = dma.vmem_to_hbm [thread:$0]  (%p5580_p1), %s5402_s5, 128, %s3201_s4, %s3184_s19  }
0x1b9e   : > { %s3526_s2 = sshll.u32 %s5576_s26, 4  ;;  %s3216_s13 = sshll.u32 %s5090_s17, 4  ;;  %s3217_s13 = int_to_ptr.vmem [resolvable:$true] %s3216_s13 }
0x1b9f   : > { %s5581_s16 = sld [smem:[#allocation43_spill]]  ;;  %s3189_s18 = scalar_lea.sflag [#allocation18], %s5067_s8 }
0x1ba0   : > { %s4466_s10 = scalar_lea.vmem %s3217_s13, 16  ;;  %p5582_p12 = scmp.ne.s32.totalorder %s5557_s3, 0 }
0x1ba1   : > { %p4467_p9 = scmp.ne.s32.totalorder %s3217_s13, %s4466_s10  ;;  %s4626_s24 = smov [#allocation17]  }
0x1ba2   : > { %s4470_s22 = sshll.u32 %s4626_s24, 4  ;;  %s4471_s22 = int_to_ptr.vmem [resolvable:$false] %s4470_s22 }
0x1ba3   : > { %p4468_p11 = pnand %p4467_p9, %p5582_p12  ;;  %s4472_s7 = scalar_lea.vmem %s4471_s22, 32 }
0x1ba4   : > { %p4473_p6 = scmp.lt.s32.totalorder %s3217_s13, %s4471_s22  ;;  %p4474_p1 = scmp.lt.s32.totalorder %s4472_s7, %s4466_s10 }
0x1ba5   : > { %s5429_s23 = scalar_lea.hbm %s5581_s16, %s3526_s2  ;;  %p4469_p8 = pneg %p4468_p11 }
0x1ba6   : > { %p4475_p5 = por %p4474_p1, %p4473_p6 }
0x1ba8   : > { %p4476_p4 = pnand %p4475_p5, %p4469_p8 }
0x1baa   : > { %4479 = shalt.err (!%p4476_p4)
}
0x1bab   : > { %s4480_s8 = scalar_lea.hbm %s5429_s23, 16  ;;  %s4484_s5 = scalar_lea.hbm %s5581_s16, 32 }
0x1bac   : > { %p4481_p0 = scmp.ne.s32.totalorder %s5429_s23, %s4480_s8  ;;  %p4485_p10 = scmp.lt.u32.totalorder %s5429_s23, %s5581_s16 }
0x1bad   : > { %p4486_p3 = scmp.lt.u32.totalorder %s4484_s5, %s4480_s8  ;;  %p4488_p9 = scmp.lt.u32.totalorder %s4480_s8, %s5429_s23 }
0x1bae   : > { %p4482_p7 = pnand %p4481_p0, %p5582_p12 }
0x1baf   : > { %p4487_p2 = por %p4486_p3, %p4485_p10 }
0x1bb0   : > { %p4483_p13 = pneg %p4482_p7 }
0x1bb1   : > { %p4489_p11 = por %p4488_p9, %p4487_p2 }
0x1bb3   : > { %p4490_p8 = pnand %p4489_p11, %p4483_p13 }
0x1bb5   : > { %4493 = shalt.err (!%p4490_p8)
}
0x1bb6   : > { %4011 = dma.vmem_to_hbm [thread:$0]  (%p5582_p12), %s3217_s13, 16, %s5429_s23, %s3189_s18  }
0x1bb7 PF: > { %p4055_p6 = scmp.ge.s32.totalorder %s4608_s15, 2  ;;  %s3228_s6 = sand.u32 1, %s4580_s30  }
0x1bb8   : > { %p5583_p1 = scmp.ne.s32.totalorder %s5555_s21, 0  ;;  %s3229_s20 = scalar_lea.sflag [#allocation6], %s3228_s6 }
0x1bba   : > { %p4038_p5 = pnand %p4055_p6, %p5583_p1 }
0x1bbc   : > { %4559 = dma.done.wait (!%p4038_p5), %s3229_s20, 128  }
0x1bbd   : > { %4561 = vsyncadd (!%p4038_p5), %s3229_s20, 4294967168  ;;  %s3237_s2 = sand.u32 1, %s4568_s27   ;;  %p5584_p4 = scmp.ne.s32.totalorder %s5558_s12, 0 }
0x1bbe   : > { %s3238_s1 = scalar_lea.sflag [#allocation18], %s3237_s2 }
0x1bbf   : > { %p4041_p0 = pnand %p4055_p6, %p5584_p4 }
0x1bc1   : > { %4563 = dma.done.wait (!%p4041_p0), %s3238_s1, 16  }
0x1bc2   : > { %4565 = vsyncadd (!%p4041_p0), %s3238_s1, 4294967280  ;;  %s33_s15 = sadd.s32 1, %s4608_s15   ;;  %s5585_s3 = sld [smem:[#allocation33_spill]] }
0x1bc3   : > { %p30_p12 = scmp.ge.s32.totalorder %s33_s15, 6   ;;  %s5586_s21 = sld [smem:[#allocation26_spill]] }
0x1bc4   : > { %s5587_s10 = sld [smem:[#allocation34_spill]]  ;;  %s5588_s11 = sld [smem:[#allocation29_spill]] }
0x1bc5   : > { %s5589_s13 = sld [smem:[#allocation31_spill]]  ;;  %s5590_s23 = sld [smem:[#allocation32_spill]] }
0x1bc6   : > { %s5591_s27 = smov %s4572_s28  ;;  %s5592_s28 = smov %s4576_s29 }
0x1bc7   : > { %s5594_s30 = smov %s4584_s9  ;;  %s5596_s12 = smov %s4604_s14 }
0x1bc8   : > { %s5593_s29 = smov %s5585_s3  ;;  %32 = sbr.rel (!%p30_p12) target bundleno = 25 (0x19), region = 207 }
0x1bc9   : > { %s5595_s9 = smov %s5586_s21 }
0x1bcb   : > { %s5597_s14 = smov %s5590_s23 }
0x1bcf   :  { %3242 = vsyncpa [#allocation5], 1 }
0x1bd0   :  { %3244 = vsyncpa [#allocation5 + $0x1], 1 }
0x1bd1   :  { %3245 = vsyncpa [#allocation8], 1 }
0x1bd2   :  { %3247 = vsyncpa [#allocation8 + $0x1], 1 }
0x1bd3   :  { %3248 = vsyncpa [#allocation11], 1 }
0x1bd4   :  { %3249 = vsyncpa [#allocation14], 1 }
0x1bd5   :  { %3250 = vsyncpa [#allocation6], 1 }
0x1bd6   :  { %3252 = vsyncpa [#allocation6 + $0x1], 1 }
0x1bd7   :  { %3253 = vsyncpa [#allocation18], 1 }
0x1bd8   :  { %3255 = vsyncpa [#allocation18 + $0x1], 1 }

</bundles_post_ra>
